<compile_context>
chip_gen: v6e
topology: v6e:2x2x1
jax: 0.10.0
libtpu: 0.0.40
codegen_flags: <defaults>
</compile_context>

<pallas_src>
import functools
import math

import jax
import jax.numpy as jnp
from jax import lax
from jax.experimental import pallas as pl
from jax.experimental.pallas import tpu as pltpu

LN_EPS = 1e-5  # PyTorch nn.LayerNorm default


def _layer_norm(x, w, b):
    mu = jnp.mean(x, axis=-1, keepdims=True)
    var = jnp.mean((x - mu) ** 2, axis=-1, keepdims=True)
    return (x - mu) * lax.rsqrt(var + LN_EPS) * w + b


def _gelu(x):
    # TODO(synk): PyTorch nn.GELU() default is the exact erf formulation; the
    # tanh approximation is used because erf lowering on Mosaic is not
    # guaranteed across versions (~1e-3-level deviation from the reference).
    c = math.sqrt(2.0 / math.pi)
    return 0.5 * x * (1.0 + jnp.tanh(c * (x + 0.044715 * x * x * x)))


def gss_kernel(x_ref, ln1w_ref, ln1b_ref, wuv_ref, ln2w_ref, ln2b_ref,
               pd_ref, k_ref, wg_ref, wo_ref, bo_ref, out_ref,
               *, gelu_in_bf16):
    L, H = k_ref.shape
    rows = x_ref.shape[0]          # rows = Bt * L (whole sequences, back-to-back)
    DH = wuv_ref.shape[1] - H

    x = x_ref[...]                                            # (rows, D) f32
    xn = _layer_norm(x, ln1w_ref[...], ln1b_ref[...])         # GSS.norm
    xn_b = xn.astype(jnp.bfloat16)

    # Fused to_u / to_v: one MXU matmul over the concatenated (D, DH+H) bf16
    # weight (f32 accumulation), one GELU launch over the (rows, DH+H) slab.
    # DH = 4*dim is a multiple of 128 at production dims, so the u/v slices
    # fall on lane-tile boundaries (no relayout).
    uv = jnp.dot(xn_b, wuv_ref[...], preferred_element_type=jnp.float32)
    if gelu_in_bf16:                       # v6e/v7x: bf16 EUP/VPU (~2x GELU throughput)
        uv = _gelu(uv.astype(jnp.bfloat16))
        u = uv[:, :DH]                     # stays bf16 for the gate product
        v = uv[:, DH:].astype(jnp.float32)
    else:                                  # v5e: no bf16 VPU/EUP -> keep f32
        uv = _gelu(uv)
        u = uv[:, :DH]
        v = uv[:, DH:]

    # ---- DSS(v) ----
    vn = _layer_norm(v, ln2w_ref[...], ln2b_ref[...])         # (rows, H) f32
    dss_residual = vn * pd_ref[...]                           # u * param_D

    # Causal per-channel convolution  y[t,h] = sum_{s<=t} K[s,h] * vn[t-s,h]
    # (identical to the rfft(n=2L)*rfft(n=2L)->irfft->[:L] path of the
    # reference: zero-padded FFT == linear causal convolution).
    # The block holds whole sequences contiguously, so a cumulative shift-by-1
    # along the row axis plus the (t_in_seq >= s) mask both applies the shift
    # inside each sequence and zeroes cross-sequence / wrap-around terms.
    # fori_loop carries the shifted buffer -> live range bounded to one copy.
    t_in_seq = lax.broadcasted_iota(jnp.int32, (rows, H), 0) % L
    y0 = k_ref[0:1, :] * vn                                   # s = 0 term

    def conv_step(s, carry):
        y, shifted = carry
        shifted = pltpu.roll(shifted, shift=1, axis=0)        # XLU sublane roll by 1
        k_s = k_ref[pl.ds(s, 1), :]                           # dynamic (1, H) row load
        y = y + jnp.where(t_in_seq >= s, k_s * shifted, 0.0)
        return y, shifted

    y, _ = lax.fori_loop(1, L, conv_step, (y0, vn), unroll=True)
    # TODO(synk): for L >= ~64 switch to a lower-triangular Toeplitz matmul on
    # the MXU (or keep the FFT path outside the kernel) instead of this O(L)
    # VPU/XLU loop.
    v_dss = y + dss_residual                                  # (rows, H)

    # to_gate, gating, to_out (+bias), outer residual.
    gate = jnp.dot(v_dss.astype(jnp.bfloat16), wg_ref[...],
                   preferred_element_type=jnp.float32)        # (rows, DH)
    gu = (gate * u).astype(jnp.bfloat16)
    out = jnp.dot(gu, wo_ref[...],
                  preferred_element_type=jnp.float32) + bo_ref[...]
    out_ref[...] = (out + x).astype(out_ref.dtype)


def _vmem_budget_and_limit(device_kind):
    """(activation budget bytes, explicit vmem_limit_bytes or None)."""
    kind = device_kind.lower()
    if "v7" in kind:                       # 64 MiB physical VMEM per TC
        return 24 * 2**20, 48 * 2**20
    if "v6" in kind:                       # 128 MiB physical, 32 MiB default scoped
        return 48 * 2**20, 80 * 2**20
    if "v5" in kind:                       # 128 MiB physical, 16 MiB default scoped
        return 40 * 2**20, 64 * 2**20
    return 12 * 2**20, None                # unknown generation: stay conservative


def _pick_batch_tile(B, L, D, DH, H, budget_bytes):
    """Largest divisor Bt of B whose working set fits `budget_bytes`, while
    keeping at least 2 grid steps so dimension_semantics=('parallel',) can
    shard across both TensorCores on v7x (harmless on single-TC v5e/v6e)."""
    # per-row bytes: f32 activations (xn, uv, vn, conv carry, gate, ...) + bf16 copies
    per_row = 4 * (2 * D + 2 * (DH + H) + 6 * H + 2 * DH) + 2 * (D + DH + H)
    # fixed footprint: weight/vector blocks, conservatively assumed double-buffered
    weights = 2 * (2 * (D * (DH + H) + H * DH + DH * D)
                   + 4 * (L * H + 3 * D + 4 * H))
    max_bt = max(1, B // 2) if B > 1 else 1
    best = 1
    for bt in range(1, max_bt + 1):
        if B % bt:
            continue
        rows = bt * L
        if rows % 8:
            continue                      # keep the row block sublane-aligned
        io = 2 * 2 * rows * D * 4         # double-buffered x / out blocks
        if weights + io + rows * per_row > budget_bytes:
            break
        best = bt
        if rows >= 1024:                  # row slab already MXU/lane-dense; stop
            break
    return best


def _dss_kernel_K(params, L, dss_kernel_lambda_imag_exp):
    """Parameter-only DSS kernel K = Re(C' · S), shape (L, H), f32."""
    lr = -jnp.exp(params["lambda_real"])                          # (N,)
    li = jnp.exp(params["lambda_imag"]) if dss_kernel_lambda_imag_exp \
        else params["lambda_imag"]                                # (N,)
    t = jnp.arange(L, dtype=jnp.float32)
    mag = jnp.exp(lr[:, None] * t[None, :])                       # (N, L)
    s_r = mag * jnp.cos(li[:, None] * t[None, :])                 # Re(exp(Lambda*t))
    s_i = mag * jnp.sin(li[:, None] * t[None, :])                 # Im(exp(Lambda*t))
    e_r = jnp.exp(lr) * jnp.cos(li) - 1.0                         # exp(Lambda) - 1
    e_i = jnp.exp(lr) * jnp.sin(li)
    den = lr * lr + li * li
    w_r = (e_r * lr + e_i * li) / den                             # (exp(L)-1)/Lambda
    w_i = (e_i * lr - e_r * li) / den
    c_r = params["c_real"] * w_r - params["c_imag"] * w_i         # (H, N)
    c_i = params["c_real"] * w_i + params["c_imag"] * w_r         # (H, N)
    return (jnp.dot(s_r.T, c_r.T) - jnp.dot(s_i.T, c_i.T)).astype(jnp.float32)


def gss_forward(x, params, *, dss_kernel_lambda_imag_exp=True, reverse_seq=False):
    """x: (B, L, D) float32. Returns (B, L, D) float32."""
    B, L, D = x.shape
    DH = params["w_u"].shape[1]
    H = params["w_v"].shape[1]

    if reverse_seq:
        x = jnp.flip(x, axis=1)

    # ---- parameter-only glue computed once in the wrapper (f32) ----
    K = _dss_kernel_K(params, L, dss_kernel_lambda_imag_exp)      # (L, H)

    # bf16 weights for the MXU (f32 accumulation happens in-kernel).
    wuv = jnp.concatenate([params["w_u"], params["w_v"]], axis=1).astype(jnp.bfloat16)
    wg = params["w_gate"].astype(jnp.bfloat16)
    wo = params["w_out"].astype(jnp.bfloat16)

    device_kind = jax.devices()[0].device_kind
    gelu_bf16 = ("v6" in device_kind.lower()) or ("v7" in device_kind.lower())
    budget, vmem_limit = _vmem_budget_and_limit(device_kind)

    Bt = _pick_batch_tile(B, L, D, DH, H, budget)
    rows = Bt * L
    x2 = x.reshape(B * L, D).astype(jnp.float32)

    # TODO(synk): for production configs with dim / dss_kernel_H below 128,
    # pad D (and H) to 128 wrapper-side (with masked LayerNorm statistics) to
    # get unmasked full-width vst on the output path; skipped here because at
    # the default module dims (dim>=128, H=256) the output is already lane-dense.

    cost = pl.CostEstimate(
        flops=2 * B * L * (D * (DH + H) + H * DH + DH * D + L * H),
        transcendentals=B * L * (DH + H + 2),
        bytes_accessed=(8 * B * L * D
                        + 2 * (D * (DH + H) + H * DH + DH * D)
                        + 4 * (L * H + 4 * D + 3 * H)),
    )

    def build(single_buffer_consts):
        cmode = {"pipeline_mode": pl.Buffered(1)} if single_buffer_consts else {}
        const = lambda shape: pl.BlockSpec(shape, lambda i: (0, 0), **cmode)
        return pl.pallas_call(
            functools.partial(gss_kernel, gelu_in_bf16=gelu_bf16),
            out_shape=jax.ShapeDtypeStruct((B * L, D), jnp.float32),
            grid_spec=pltpu.PrefetchScalarGridSpec(
                num_scalar_prefetch=0,
                grid=(B // Bt,),
                in_specs=[
                    pl.BlockSpec((rows, D), lambda i: (i, 0)),   # x rows
                    const((1, D)), const((1, D)),                # ln1 w, b
                    const((D, DH + H)),                          # fused W_u|W_v (bf16)
                    const((1, H)), const((1, H)),                # ln2 w, b
                    const((1, H)),                               # param_D
                    const((L, H)),                               # DSS kernel K
                    const((H, DH)),                              # W_gate (bf16)
                    const((DH, D)), const((1, D)),               # W_out (bf16), b_out
                ],
                out_specs=pl.BlockSpec((rows, D), lambda i: (i, 0)),
            ),
            compiler_params=pltpu.CompilerParams(
                dimension_semantics=("parallel",),               # megacore-shardable
                vmem_limit_bytes=vmem_limit),
            cost_estimate=cost,
        )

    args = (x2,
            params["ln1_w"], params["ln1_b"],
            wuv,
            params["ln2_w"], params["ln2_b"],
            params["param_D"],
            K,
            wg, wo, params["b_out"])

    try:
        out2 = build(True)(*args)
    except Exception:
        # pipeline_mode=pl.Buffered(1) not supported on this JAX/Mosaic version:
        # fall back to default double-buffered constant blocks.
        out2 = build(False)(*args)

    out = out2.reshape(B, L, D)
    if reverse_seq:
        out = jnp.flip(out, axis=1)
    return out


def _reference_forward(x, params, *, dss_kernel_lambda_imag_exp=True):
    """Pure-JAX f32 reference (same math; conv in explicit Toeplitz form)."""
    B, L, D = x.shape
    H = params["w_v"].shape[1]
    xn = _layer_norm(x, params["ln1_w"], params["ln1_b"])
    u = _gelu(xn @ params["w_u"])
    v = _gelu(xn @ params["w_v"])
    vn = _layer_norm(v, params["ln2_w"], params["ln2_b"])
    resid = vn * params["param_D"]
    K = _dss_kernel_K(params, L, dss_kernel_lambda_imag_exp)      # (L, H)
    idx = jnp.arange(L)[:, None] - jnp.arange(L)[None, :]         # t - s
    Kmat = jnp.where(idx[..., None] >= 0, K[jnp.clip(idx, 0, L - 1)], 0.0)  # (L,L,H)
    y = jnp.einsum("bsh,tsh->bth", vn, Kmat)                      # causal conv
    v_dss = y + resid
    gate = v_dss @ params["w_gate"]
    out = (gate * u) @ params["w_out"] + params["b_out"]
    return out + x


if __name__ == "__main__":
    # Small shapes consistent with the module: dim=32, expansion=4 -> hidden=128,
    # dss_kernel_H=64, dss_kernel_N=128, batch=2, seq=8.
    B, L, D = 2, 8, 32
    DH = 4 * D          # dim_hidden
    H = 64              # dss_kernel_H
    N = 128             # dss_kernel_N

    key = jax.random.PRNGKey(0)
    ks = jax.random.split(key, 10)
    params = {
        "ln1_w": jnp.ones((1, D), jnp.float32),
        "ln1_b": jnp.zeros((1, D), jnp.float32),
        "w_u": 0.05 * jax.random.normal(ks[0], (D, DH), jnp.float32),
        "w_v": 0.05 * jax.random.normal(ks[1], (D, H), jnp.float32),
        "ln2_w": jnp.ones((1, H), jnp.float32),
        "ln2_b": jnp.zeros((1, H), jnp.float32),
        "param_D": jax.random.normal(ks[2], (1, H), jnp.float32),
        "lambda_real": jax.random.normal(ks[3], (N,), jnp.float32),
        "lambda_imag": jax.random.normal(ks[4], (N,), jnp.float32),
        "c_real": jax.random.normal(ks[5], (H, N), jnp.float32),
        "c_imag": jax.random.normal(ks[6], (H, N), jnp.float32),
        "w_gate": 0.05 * jax.random.normal(ks[7], (H, DH), jnp.float32),
        "w_out": 0.05 * jax.random.normal(ks[8], (DH, D), jnp.float32),
        "b_out": jnp.zeros((1, D), jnp.float32),
    }
    x = jax.random.normal(ks[9], (B, L, D), jnp.float32)

    out = gss_forward(x, params)
    jax.block_until_ready(out)
    assert out.shape == (B, L, D)

    # Guard against silent math errors (e.g. anti-causal conv); tolerance is
    # sized for the bf16 MXU operands / bf16 GELU vs the pure-f32 reference.
    ref = _reference_forward(x, params)
    max_err = float(jnp.max(jnp.abs(out - ref)))
    scale = float(jnp.max(jnp.abs(ref)))
    assert max_err <= 0.05 * (scale + 1.0), (max_err, scale)

    print("KERNEL_OK")
</pallas_src>

<mosaic_0001>
module attributes {stable_mosaic.version = 11 : i64} {
  func.func @gss_kernel(%arg0: i32, %arg1: memref<8x32xf32, #tpu.memory_space<vmem>>, %arg2: memref<1x32xf32, #tpu.memory_space<vmem>>, %arg3: memref<1x32xf32, #tpu.memory_space<vmem>>, %arg4: memref<32x192xbf16, #tpu.memory_space<vmem>>, %arg5: memref<1x64xf32, #tpu.memory_space<vmem>>, %arg6: memref<1x64xf32, #tpu.memory_space<vmem>>, %arg7: memref<1x64xf32, #tpu.memory_space<vmem>>, %arg8: memref<8x64xf32, #tpu.memory_space<vmem>>, %arg9: memref<64x128xbf16, #tpu.memory_space<vmem>>, %arg10: memref<128x32xbf16, #tpu.memory_space<vmem>>, %arg11: memref<1x32xf32, #tpu.memory_space<vmem>>, %arg12: memref<8x32xf32, #tpu.memory_space<vmem>>) attributes {dimension_semantics = [#tpu.dimension_semantics<parallel>], iteration_bounds = array<i64: 2>, scalar_prefetch = 0 : i64, scratch_operands = 0 : i64, tpu.core_type = #tpu.core_type<tc>, window_params = [{transform_indices = @transform_0, window_bounds = array<i64: 8, 32>}, {pipeline_mode = #tpu.pipeline_mode<synchronous>, transform_indices = @transform_1, window_bounds = array<i64: 1, 32>}, {pipeline_mode = #tpu.pipeline_mode<synchronous>, transform_indices = @transform_2, window_bounds = array<i64: 1, 32>}, {pipeline_mode = #tpu.pipeline_mode<synchronous>, transform_indices = @transform_3, window_bounds = array<i64: 32, 192>}, {pipeline_mode = #tpu.pipeline_mode<synchronous>, transform_indices = @transform_4, window_bounds = array<i64: 1, 64>}, {pipeline_mode = #tpu.pipeline_mode<synchronous>, transform_indices = @transform_5, window_bounds = array<i64: 1, 64>}, {pipeline_mode = #tpu.pipeline_mode<synchronous>, transform_indices = @transform_6, window_bounds = array<i64: 1, 64>}, {pipeline_mode = #tpu.pipeline_mode<synchronous>, transform_indices = @transform_7, window_bounds = array<i64: 8, 64>}, {pipeline_mode = #tpu.pipeline_mode<synchronous>, transform_indices = @transform_8, window_bounds = array<i64: 64, 128>}, {pipeline_mode = #tpu.pipeline_mode<synchronous>, transform_indices = @transform_9, window_bounds = array<i64: 128, 32>}, {pipeline_mode = #tpu.pipeline_mode<synchronous>, transform_indices = @transform_10, window_bounds = array<i64: 1, 32>}, {transform_indices = @transform_11, window_bounds = array<i64: 8, 32>}]} {
    %c0 = arith.constant 0 : index
    %c0_0 = arith.constant 0 : index
    %0 = vector.load %arg1[%c0, %c0_0] : memref<8x32xf32, #tpu.memory_space<vmem>>, vector<8x32xf32>
    %c0_1 = arith.constant 0 : index
    %c0_2 = arith.constant 0 : index
    %1 = vector.load %arg2[%c0_1, %c0_2] : memref<1x32xf32, #tpu.memory_space<vmem>>, vector<1x32xf32>
    %c0_3 = arith.constant 0 : index
    %c0_4 = arith.constant 0 : index
    %2 = vector.load %arg3[%c0_3, %c0_4] : memref<1x32xf32, #tpu.memory_space<vmem>>, vector<1x32xf32>
    %cst = arith.constant dense<0.000000e+00> : vector<8xf32>
    %3 = vector.multi_reduction <add>, %0, %cst [1] : vector<8x32xf32> to vector<8xf32>
    %4 = vector.shape_cast %3 : vector<8xf32> to vector<8x1xf32>
    %cst_5 = arith.constant 3.200000e+01 : f32
    %5 = vector.broadcast %cst_5 : f32 to vector<8x1xf32>
    %6 = arith.divf %4, %5 : vector<8x1xf32>
    %7 = vector.broadcast %6 : vector<8x1xf32> to vector<8x32xf32>
    %8 = arith.subf %0, %7 : vector<8x32xf32>
    %9 = arith.mulf %8, %8 : vector<8x32xf32>
    %cst_6 = arith.constant dense<0.000000e+00> : vector<8xf32>
    %10 = vector.multi_reduction <add>, %9, %cst_6 [1] : vector<8x32xf32> to vector<8xf32>
    %11 = vector.shape_cast %10 : vector<8xf32> to vector<8x1xf32>
    %cst_7 = arith.constant 3.200000e+01 : f32
    %12 = vector.broadcast %cst_7 : f32 to vector<8x1xf32>
    %13 = arith.divf %11, %12 : vector<8x1xf32>
    %14 = vector.broadcast %6 : vector<8x1xf32> to vector<8x32xf32>
    %15 = arith.subf %0, %14 : vector<8x32xf32>
    %cst_8 = arith.constant 9.99999974E-6 : f32
    %16 = vector.broadcast %cst_8 : f32 to vector<8x1xf32>
    %17 = arith.addf %13, %16 : vector<8x1xf32>
    %18 = math.rsqrt %17 : vector<8x1xf32>
    %19 = vector.broadcast %18 : vector<8x1xf32> to vector<8x32xf32>
    %20 = arith.mulf %15, %19 : vector<8x32xf32>
    %21 = vector.broadcast %1 : vector<1x32xf32> to vector<8x32xf32>
    %22 = arith.mulf %20, %21 : vector<8x32xf32>
    %23 = vector.broadcast %2 : vector<1x32xf32> to vector<8x32xf32>
    %24 = arith.addf %22, %23 : vector<8x32xf32>
    %25 = arith.truncf %24 : vector<8x32xf32> to vector<8x32xbf16>
    %c0_9 = arith.constant 0 : index
    %c0_10 = arith.constant 0 : index
    %26 = vector.load %arg4[%c0_9, %c0_10] : memref<32x192xbf16, #tpu.memory_space<vmem>>, vector<32x192xbf16>
    %cst_11 = arith.constant dense<0.000000e+00> : vector<8x192xf32>
    %27 = tpu.matmul %25, %26, %cst_11 {dimension_numbers = #tpu.dot_dimension_numbers<[1], [0], [0], [1], [0, 0, 1, 1], [], []>} : vector<8x32xbf16>, vector<32x192xbf16>, vector<8x192xf32> -> vector<8x192xf32>
    %cst_12 = arith.constant 5.000000e-01 : f32
    %28 = vector.broadcast %cst_12 : f32 to vector<8x192xf32>
    %29 = arith.mulf %28, %27 : vector<8x192xf32>
    %cst_13 = arith.constant 4.471500e-02 : f32
    %30 = vector.broadcast %cst_13 : f32 to vector<8x192xf32>
    %31 = arith.mulf %30, %27 : vector<8x192xf32>
    %32 = arith.mulf %31, %27 : vector<8x192xf32>
    %33 = arith.mulf %32, %27 : vector<8x192xf32>
    %34 = arith.addf %27, %33 : vector<8x192xf32>
    %cst_14 = arith.constant 0.797884583 : f32
    %35 = vector.broadcast %cst_14 : f32 to vector<8x192xf32>
    %36 = arith.mulf %35, %34 : vector<8x192xf32>
    %37 = math.tanh %36 : vector<8x192xf32>
    %cst_15 = arith.constant 1.000000e+00 : f32
    %38 = vector.broadcast %cst_15 : f32 to vector<8x192xf32>
    %39 = arith.addf %38, %37 : vector<8x192xf32>
    %40 = arith.mulf %29, %39 : vector<8x192xf32>
    %41 = vector.extract_strided_slice %40 {offsets = [0, 0], sizes = [8, 128], strides = [1, 1]} : vector<8x192xf32> to vector<8x128xf32>
    %42 = vector.extract_strided_slice %40 {offsets = [0, 128], sizes = [8, 64], strides = [1, 1]} : vector<8x192xf32> to vector<8x64xf32>
    %c0_16 = arith.constant 0 : index
    %c0_17 = arith.constant 0 : index
    %43 = vector.load %arg5[%c0_16, %c0_17] : memref<1x64xf32, #tpu.memory_space<vmem>>, vector<1x64xf32>
    %c0_18 = arith.constant 0 : index
    %c0_19 = arith.constant 0 : index
    %44 = vector.load %arg6[%c0_18, %c0_19] : memref<1x64xf32, #tpu.memory_space<vmem>>, vector<1x64xf32>
    %cst_20 = arith.constant dense<0.000000e+00> : vector<8xf32>
    %45 = vector.multi_reduction <add>, %42, %cst_20 [1] : vector<8x64xf32> to vector<8xf32>
    %46 = vector.shape_cast %45 : vector<8xf32> to vector<8x1xf32>
    %cst_21 = arith.constant 6.400000e+01 : f32
    %47 = vector.broadcast %cst_21 : f32 to vector<8x1xf32>
    %48 = arith.divf %46, %47 : vector<8x1xf32>
    %49 = vector.broadcast %48 : vector<8x1xf32> to vector<8x64xf32>
    %50 = arith.subf %42, %49 : vector<8x64xf32>
    %51 = arith.mulf %50, %50 : vector<8x64xf32>
    %cst_22 = arith.constant dense<0.000000e+00> : vector<8xf32>
    %52 = vector.multi_reduction <add>, %51, %cst_22 [1] : vector<8x64xf32> to vector<8xf32>
    %53 = vector.shape_cast %52 : vector<8xf32> to vector<8x1xf32>
    %cst_23 = arith.constant 6.400000e+01 : f32
    %54 = vector.broadcast %cst_23 : f32 to vector<8x1xf32>
    %55 = arith.divf %53, %54 : vector<8x1xf32>
    %56 = vector.broadcast %48 : vector<8x1xf32> to vector<8x64xf32>
    %57 = arith.subf %42, %56 : vector<8x64xf32>
    %cst_24 = arith.constant 9.99999974E-6 : f32
    %58 = vector.broadcast %cst_24 : f32 to vector<8x1xf32>
    %59 = arith.addf %55, %58 : vector<8x1xf32>
    %60 = math.rsqrt %59 : vector<8x1xf32>
    %61 = vector.broadcast %60 : vector<8x1xf32> to vector<8x64xf32>
    %62 = arith.mulf %57, %61 : vector<8x64xf32>
    %63 = vector.broadcast %43 : vector<1x64xf32> to vector<8x64xf32>
    %64 = arith.mulf %62, %63 : vector<8x64xf32>
    %65 = vector.broadcast %44 : vector<1x64xf32> to vector<8x64xf32>
    %66 = arith.addf %64, %65 : vector<8x64xf32>
    %c0_25 = arith.constant 0 : index
    %c0_26 = arith.constant 0 : index
    %67 = vector.load %arg7[%c0_25, %c0_26] : memref<1x64xf32, #tpu.memory_space<vmem>>, vector<1x64xf32>
    %68 = vector.broadcast %67 : vector<1x64xf32> to vector<8x64xf32>
    %69 = arith.mulf %66, %68 : vector<8x64xf32>
    %70 = tpu.iota {dimensions = array<i32: 0>} : vector<8x64xi32>
    %c8_i32 = arith.constant 8 : i32
    %c0_i32 = arith.constant 0 : i32
    %71 = arith.cmpi eq, %c8_i32, %c0_i32 : i32
    %c1_i32 = arith.constant 1 : i32
    %72 = arith.select %71, %c1_i32, %c8_i32 : i32
    %73 = vector.broadcast %72 : i32 to vector<8x64xi32>
    %74 = arith.remsi %70, %73 : vector<8x64xi32>
    %c0_i32_27 = arith.constant 0 : i32
    %75 = vector.broadcast %c0_i32_27 : i32 to vector<8x64xi32>
    %76 = arith.cmpi ne, %74, %75 : vector<8x64xi32>
    %c0_i32_28 = arith.constant 0 : i32
    %77 = vector.broadcast %c0_i32_28 : i32 to vector<8x64xi32>
    %78 = arith.cmpi slt, %74, %77 : vector<8x64xi32>
    %c0_i32_29 = arith.constant 0 : i32
    %79 = arith.cmpi slt, %72, %c0_i32_29 : i32
    %80 = vector.broadcast %79 : i1 to vector<8x64xi1>
    %81 = vector.broadcast %80 : vector<8x64xi1> to vector<8x64xi1>
    %82 = arith.xori %78, %81 : vector<8x64xi1>
    %83 = arith.andi %82, %76 : vector<8x64xi1>
    %84 = vector.broadcast %72 : i32 to vector<8x64xi32>
    %85 = arith.addi %74, %84 : vector<8x64xi32>
    %86 = arith.select %83, %85, %74 : vector<8x64xi1>, vector<8x64xi32>
    %c0_30 = arith.constant 0 : index
    %c0_31 = arith.constant 0 : index
    %87 = vector.load %arg8[%c0_30, %c0_31] : memref<8x64xf32, #tpu.memory_space<vmem>>, vector<1x64xf32>
    %88 = vector.broadcast %87 : vector<1x64xf32> to vector<8x64xf32>
    %89 = arith.mulf %88, %66 : vector<8x64xf32>
    %c1_i32_32 = arith.constant 1 : i32
    %c1_i32_33 = arith.constant 1 : i32
    %90 = tpu.dynamic_rotate %66 by %c1_i32_33 dim 0 : vector<8x64xf32>, i32 -> vector<8x64xf32>
    %91 = arith.index_cast %c1_i32_32 : i32 to index
    %c0_34 = arith.constant 0 : index
    %92 = vector.load %arg8[%91, %c0_34] : memref<8x64xf32, #tpu.memory_space<vmem>>, vector<1x64xf32>
    %93 = vector.broadcast %c1_i32_32 : i32 to vector<8x64xi32>
    %94 = arith.cmpi sge, %86, %93 : vector<8x64xi32>
    %95 = vector.broadcast %92 : vector<1x64xf32> to vector<8x64xf32>
    %96 = arith.mulf %95, %90 : vector<8x64xf32>
    %cst_35 = arith.constant 0.000000e+00 : f32
    %97 = vector.broadcast %cst_35 : f32 to vector<8x64xf32>
    %98 = arith.select %94, %96, %97 : vector<8x64xi1>, vector<8x64xf32>
    %99 = arith.addf %89, %98 : vector<8x64xf32>
    %c2_i32 = arith.constant 2 : i32
    %c1_i32_36 = arith.constant 1 : i32
    %100 = tpu.dynamic_rotate %90 by %c1_i32_36 dim 0 : vector<8x64xf32>, i32 -> vector<8x64xf32>
    %101 = arith.index_cast %c2_i32 : i32 to index
    %c0_37 = arith.constant 0 : index
    %102 = vector.load %arg8[%101, %c0_37] : memref<8x64xf32, #tpu.memory_space<vmem>>, vector<1x64xf32>
    %103 = vector.broadcast %c2_i32 : i32 to vector<8x64xi32>
    %104 = arith.cmpi sge, %86, %103 : vector<8x64xi32>
    %105 = vector.broadcast %102 : vector<1x64xf32> to vector<8x64xf32>
    %106 = arith.mulf %105, %100 : vector<8x64xf32>
    %cst_38 = arith.constant 0.000000e+00 : f32
    %107 = vector.broadcast %cst_38 : f32 to vector<8x64xf32>
    %108 = arith.select %104, %106, %107 : vector<8x64xi1>, vector<8x64xf32>
    %109 = arith.addf %99, %108 : vector<8x64xf32>
    %c3_i32 = arith.constant 3 : i32
    %c1_i32_39 = arith.constant 1 : i32
    %110 = tpu.dynamic_rotate %100 by %c1_i32_39 dim 0 : vector<8x64xf32>, i32 -> vector<8x64xf32>
    %111 = arith.index_cast %c3_i32 : i32 to index
    %c0_40 = arith.constant 0 : index
    %112 = vector.load %arg8[%111, %c0_40] : memref<8x64xf32, #tpu.memory_space<vmem>>, vector<1x64xf32>
    %113 = vector.broadcast %c3_i32 : i32 to vector<8x64xi32>
    %114 = arith.cmpi sge, %86, %113 : vector<8x64xi32>
    %115 = vector.broadcast %112 : vector<1x64xf32> to vector<8x64xf32>
    %116 = arith.mulf %115, %110 : vector<8x64xf32>
    %cst_41 = arith.constant 0.000000e+00 : f32
    %117 = vector.broadcast %cst_41 : f32 to vector<8x64xf32>
    %118 = arith.select %114, %116, %117 : vector<8x64xi1>, vector<8x64xf32>
    %119 = arith.addf %109, %118 : vector<8x64xf32>
    %c4_i32 = arith.constant 4 : i32
    %c1_i32_42 = arith.constant 1 : i32
    %120 = tpu.dynamic_rotate %110 by %c1_i32_42 dim 0 : vector<8x64xf32>, i32 -> vector<8x64xf32>
    %121 = arith.index_cast %c4_i32 : i32 to index
    %c0_43 = arith.constant 0 : index
    %122 = vector.load %arg8[%121, %c0_43] : memref<8x64xf32, #tpu.memory_space<vmem>>, vector<1x64xf32>
    %123 = vector.broadcast %c4_i32 : i32 to vector<8x64xi32>
    %124 = arith.cmpi sge, %86, %123 : vector<8x64xi32>
    %125 = vector.broadcast %122 : vector<1x64xf32> to vector<8x64xf32>
    %126 = arith.mulf %125, %120 : vector<8x64xf32>
    %cst_44 = arith.constant 0.000000e+00 : f32
    %127 = vector.broadcast %cst_44 : f32 to vector<8x64xf32>
    %128 = arith.select %124, %126, %127 : vector<8x64xi1>, vector<8x64xf32>
    %129 = arith.addf %119, %128 : vector<8x64xf32>
    %c5_i32 = arith.constant 5 : i32
    %c1_i32_45 = arith.constant 1 : i32
    %130 = tpu.dynamic_rotate %120 by %c1_i32_45 dim 0 : vector<8x64xf32>, i32 -> vector<8x64xf32>
    %131 = arith.index_cast %c5_i32 : i32 to index
    %c0_46 = arith.constant 0 : index
    %132 = vector.load %arg8[%131, %c0_46] : memref<8x64xf32, #tpu.memory_space<vmem>>, vector<1x64xf32>
    %133 = vector.broadcast %c5_i32 : i32 to vector<8x64xi32>
    %134 = arith.cmpi sge, %86, %133 : vector<8x64xi32>
    %135 = vector.broadcast %132 : vector<1x64xf32> to vector<8x64xf32>
    %136 = arith.mulf %135, %130 : vector<8x64xf32>
    %cst_47 = arith.constant 0.000000e+00 : f32
    %137 = vector.broadcast %cst_47 : f32 to vector<8x64xf32>
    %138 = arith.select %134, %136, %137 : vector<8x64xi1>, vector<8x64xf32>
    %139 = arith.addf %129, %138 : vector<8x64xf32>
    %c6_i32 = arith.constant 6 : i32
    %c1_i32_48 = arith.constant 1 : i32
    %140 = tpu.dynamic_rotate %130 by %c1_i32_48 dim 0 : vector<8x64xf32>, i32 -> vector<8x64xf32>
    %141 = arith.index_cast %c6_i32 : i32 to index
    %c0_49 = arith.constant 0 : index
    %142 = vector.load %arg8[%141, %c0_49] : memref<8x64xf32, #tpu.memory_space<vmem>>, vector<1x64xf32>
    %143 = vector.broadcast %c6_i32 : i32 to vector<8x64xi32>
    %144 = arith.cmpi sge, %86, %143 : vector<8x64xi32>
    %145 = vector.broadcast %142 : vector<1x64xf32> to vector<8x64xf32>
    %146 = arith.mulf %145, %140 : vector<8x64xf32>
    %cst_50 = arith.constant 0.000000e+00 : f32
    %147 = vector.broadcast %cst_50 : f32 to vector<8x64xf32>
    %148 = arith.select %144, %146, %147 : vector<8x64xi1>, vector<8x64xf32>
    %149 = arith.addf %139, %148 : vector<8x64xf32>
    %c7_i32 = arith.constant 7 : i32
    %c1_i32_51 = arith.constant 1 : i32
    %150 = tpu.dynamic_rotate %140 by %c1_i32_51 dim 0 : vector<8x64xf32>, i32 -> vector<8x64xf32>
    %151 = arith.index_cast %c7_i32 : i32 to index
    %c0_52 = arith.constant 0 : index
    %152 = vector.load %arg8[%151, %c0_52] : memref<8x64xf32, #tpu.memory_space<vmem>>, vector<1x64xf32>
    %153 = vector.broadcast %c7_i32 : i32 to vector<8x64xi32>
    %154 = arith.cmpi sge, %86, %153 : vector<8x64xi32>
    %155 = vector.broadcast %152 : vector<1x64xf32> to vector<8x64xf32>
    %156 = arith.mulf %155, %150 : vector<8x64xf32>
    %cst_53 = arith.constant 0.000000e+00 : f32
    %157 = vector.broadcast %cst_53 : f32 to vector<8x64xf32>
    %158 = arith.select %154, %156, %157 : vector<8x64xi1>, vector<8x64xf32>
    %159 = arith.addf %149, %158 : vector<8x64xf32>
    %c7_i32_54 = arith.constant 7 : i32
    %160 = arith.addf %159, %69 : vector<8x64xf32>
    %161 = arith.truncf %160 : vector<8x64xf32> to vector<8x64xbf16>
    %c0_55 = arith.constant 0 : index
    %c0_56 = arith.constant 0 : index
    %162 = vector.load %arg9[%c0_55, %c0_56] : memref<64x128xbf16, #tpu.memory_space<vmem>>, vector<64x128xbf16>
    %cst_57 = arith.constant dense<0.000000e+00> : vector<8x128xf32>
    %163 = tpu.matmul %161, %162, %cst_57 {dimension_numbers = #tpu.dot_dimension_numbers<[1], [0], [0], [1], [0, 0, 1, 1], [], []>} : vector<8x64xbf16>, vector<64x128xbf16>, vector<8x128xf32> -> vector<8x128xf32>
    %164 = arith.mulf %163, %41 : vector<8x128xf32>
    %165 = arith.truncf %164 : vector<8x128xf32> to vector<8x128xbf16>
    %c0_58 = arith.constant 0 : index
    %c0_59 = arith.constant 0 : index
    %166 = vector.load %arg10[%c0_58, %c0_59] : memref<128x32xbf16, #tpu.memory_space<vmem>>, vector<128x32xbf16>
    %cst_60 = arith.constant dense<0.000000e+00> : vector<8x32xf32>
    %167 = tpu.matmul %165, %166, %cst_60 {dimension_numbers = #tpu.dot_dimension_numbers<[1], [0], [0], [1], [0, 0, 1, 1], [], []>} : vector<8x128xbf16>, vector<128x32xbf16>, vector<8x32xf32> -> vector<8x32xf32>
    %c0_61 = arith.constant 0 : index
    %c0_62 = arith.constant 0 : index
    %168 = vector.load %arg11[%c0_61, %c0_62] : memref<1x32xf32, #tpu.memory_space<vmem>>, vector<1x32xf32>
    %169 = vector.broadcast %168 : vector<1x32xf32> to vector<8x32xf32>
    %170 = arith.addf %167, %169 : vector<8x32xf32>
    %171 = arith.addf %170, %0 : vector<8x32xf32>
    %c0_63 = arith.constant 0 : index
    %c0_64 = arith.constant 0 : index
    %172 = vector.load %arg12[%c0_63, %c0_64] : memref<8x32xf32, #tpu.memory_space<vmem>>, vector<8x32xf32>
    tpu.vector_store %arg12[%c0_63, %c0_64], %171 {strides = array<i32>} : memref<8x32xf32, #tpu.memory_space<vmem>>, vector<8x32xf32>,
    return
  }
  func.func @transform_0(%arg0: i32) -> (i32, i32) {
    %c0_i32 = arith.constant 0 : i32
    %c0_i32_0 = arith.constant 0 : i32
    return %arg0, %c0_i32 : i32, i32
  }
  func.func @transform_1(%arg0: i32) -> (i32, i32) {
    %c0_i32 = arith.constant 0 : i32
    %c0_i32_0 = arith.constant 0 : i32
    %c0_i32_1 = arith.constant 0 : i32
    return %c0_i32, %c0_i32_0 : i32, i32
  }
  func.func @transform_2(%arg0: i32) -> (i32, i32) {
    %c0_i32 = arith.constant 0 : i32
    %c0_i32_0 = arith.constant 0 : i32
    %c0_i32_1 = arith.constant 0 : i32
    return %c0_i32, %c0_i32_0 : i32, i32
  }
  func.func @transform_3(%arg0: i32) -> (i32, i32) {
    %c0_i32 = arith.constant 0 : i32
    %c0_i32_0 = arith.constant 0 : i32
    %c0_i32_1 = arith.constant 0 : i32
    return %c0_i32, %c0_i32_0 : i32, i32
  }
  func.func @transform_4(%arg0: i32) -> (i32, i32) {
    %c0_i32 = arith.constant 0 : i32
    %c0_i32_0 = arith.constant 0 : i32
    %c0_i32_1 = arith.constant 0 : i32
    return %c0_i32, %c0_i32_0 : i32, i32
  }
  func.func @transform_5(%arg0: i32) -> (i32, i32) {
    %c0_i32 = arith.constant 0 : i32
    %c0_i32_0 = arith.constant 0 : i32
    %c0_i32_1 = arith.constant 0 : i32
    return %c0_i32, %c0_i32_0 : i32, i32
  }
  func.func @transform_6(%arg0: i32) -> (i32, i32) {
    %c0_i32 = arith.constant 0 : i32
    %c0_i32_0 = arith.constant 0 : i32
    %c0_i32_1 = arith.constant 0 : i32
    return %c0_i32, %c0_i32_0 : i32, i32
  }
  func.func @transform_7(%arg0: i32) -> (i32, i32) {
    %c0_i32 = arith.constant 0 : i32
    %c0_i32_0 = arith.constant 0 : i32
    %c0_i32_1 = arith.constant 0 : i32
    return %c0_i32, %c0_i32_0 : i32, i32
  }
  func.func @transform_8(%arg0: i32) -> (i32, i32) {
    %c0_i32 = arith.constant 0 : i32
    %c0_i32_0 = arith.constant 0 : i32
    %c0_i32_1 = arith.constant 0 : i32
    return %c0_i32, %c0_i32_0 : i32, i32
  }
  func.func @transform_9(%arg0: i32) -> (i32, i32) {
    %c0_i32 = arith.constant 0 : i32
    %c0_i32_0 = arith.constant 0 : i32
    %c0_i32_1 = arith.constant 0 : i32
    return %c0_i32, %c0_i32_0 : i32, i32
  }
  func.func @transform_10(%arg0: i32) -> (i32, i32) {
    %c0_i32 = arith.constant 0 : i32
    %c0_i32_0 = arith.constant 0 : i32
    %c0_i32_1 = arith.constant 0 : i32
    return %c0_i32, %c0_i32_0 : i32, i32
  }
  func.func @transform_11(%arg0: i32) -> (i32, i32) {
    %c0_i32 = arith.constant 0 : i32
    %c0_i32_0 = arith.constant 0 : i32
    return %arg0, %c0_i32 : i32, i32
  }
}

module attributes {stable_mosaic.version = 11 : i64} {
  func.func @gss_kernel(%arg0: i32, %arg1: memref<8x32xf32, #tpu.memory_space<vmem>>, %arg2: memref<1x32xf32, #tpu.memory_space<vmem>>, %arg3: memref<1x32xf32, #tpu.memory_space<vmem>>, %arg4: memref<32x192xbf16, #tpu.memory_space<vmem>>, %arg5: memref<1x64xf32, #tpu.memory_space<vmem>>, %arg6: memref<1x64xf32, #tpu.memory_space<vmem>>, %arg7: memref<1x64xf32, #tpu.memory_space<vmem>>, %arg8: memref<8x64xf32, #tpu.memory_space<vmem>>, %arg9: memref<64x128xbf16, #tpu.memory_space<vmem>>, %arg10: memref<128x32xbf16, #tpu.memory_space<vmem>>, %arg11: memref<1x32xf32, #tpu.memory_space<vmem>>, %arg12: memref<8x32xf32, #tpu.memory_space<vmem>>) attributes {dimension_semantics = [#tpu.dimension_semantics<parallel>], iteration_bounds = array<i64: 2>, scalar_prefetch = 0 : i64, scratch_operands = 0 : i64, tpu.core_type = #tpu.core_type<tc>, window_params = [{transform_indices = @transform_0, window_bounds = array<i64: 8, 32>}, {pipeline_mode = #tpu.pipeline_mode<synchronous>, transform_indices = @transform_1, window_bounds = array<i64: 1, 32>}, {pipeline_mode = #tpu.pipeline_mode<synchronous>, transform_indices = @transform_2, window_bounds = array<i64: 1, 32>}, {pipeline_mode = #tpu.pipeline_mode<synchronous>, transform_indices = @transform_3, window_bounds = array<i64: 32, 192>}, {pipeline_mode = #tpu.pipeline_mode<synchronous>, transform_indices = @transform_4, window_bounds = array<i64: 1, 64>}, {pipeline_mode = #tpu.pipeline_mode<synchronous>, transform_indices = @transform_5, window_bounds = array<i64: 1, 64>}, {pipeline_mode = #tpu.pipeline_mode<synchronous>, transform_indices = @transform_6, window_bounds = array<i64: 1, 64>}, {pipeline_mode = #tpu.pipeline_mode<synchronous>, transform_indices = @transform_7, window_bounds = array<i64: 8, 64>}, {pipeline_mode = #tpu.pipeline_mode<synchronous>, transform_indices = @transform_8, window_bounds = array<i64: 64, 128>}, {pipeline_mode = #tpu.pipeline_mode<synchronous>, transform_indices = @transform_9, window_bounds = array<i64: 128, 32>}, {pipeline_mode = #tpu.pipeline_mode<synchronous>, transform_indices = @transform_10, window_bounds = array<i64: 1, 32>}, {transform_indices = @transform_11, window_bounds = array<i64: 8, 32>}]} {
    %c0 = arith.constant 0 : index
    %c0_0 = arith.constant 0 : index
    %0 = vector.load %arg1[%c0, %c0_0] : memref<8x32xf32, #tpu.memory_space<vmem>>, vector<8x32xf32>
    %c0_1 = arith.constant 0 : index
    %c0_2 = arith.constant 0 : index
    %1 = vector.load %arg2[%c0_1, %c0_2] : memref<1x32xf32, #tpu.memory_space<vmem>>, vector<1x32xf32>
    %c0_3 = arith.constant 0 : index
    %c0_4 = arith.constant 0 : index
    %2 = vector.load %arg3[%c0_3, %c0_4] : memref<1x32xf32, #tpu.memory_space<vmem>>, vector<1x32xf32>
    %cst = arith.constant dense<0.000000e+00> : vector<8xf32>
    %3 = vector.multi_reduction <add>, %0, %cst [1] : vector<8x32xf32> to vector<8xf32>
    %4 = vector.shape_cast %3 : vector<8xf32> to vector<8x1xf32>
    %cst_5 = arith.constant 3.200000e+01 : f32
    %5 = vector.broadcast %cst_5 : f32 to vector<8x1xf32>
    %6 = arith.divf %4, %5 : vector<8x1xf32>
    %7 = vector.broadcast %6 : vector<8x1xf32> to vector<8x32xf32>
    %8 = arith.subf %0, %7 : vector<8x32xf32>
    %9 = arith.mulf %8, %8 : vector<8x32xf32>
    %cst_6 = arith.constant dense<0.000000e+00> : vector<8xf32>
    %10 = vector.multi_reduction <add>, %9, %cst_6 [1] : vector<8x32xf32> to vector<8xf32>
    %11 = vector.shape_cast %10 : vector<8xf32> to vector<8x1xf32>
    %cst_7 = arith.constant 3.200000e+01 : f32
    %12 = vector.broadcast %cst_7 : f32 to vector<8x1xf32>
    %13 = arith.divf %11, %12 : vector<8x1xf32>
    %14 = vector.broadcast %6 : vector<8x1xf32> to vector<8x32xf32>
    %15 = arith.subf %0, %14 : vector<8x32xf32>
    %cst_8 = arith.constant 9.99999974E-6 : f32
    %16 = vector.broadcast %cst_8 : f32 to vector<8x1xf32>
    %17 = arith.addf %13, %16 : vector<8x1xf32>
    %18 = math.rsqrt %17 : vector<8x1xf32>
    %19 = vector.broadcast %18 : vector<8x1xf32> to vector<8x32xf32>
    %20 = arith.mulf %15, %19 : vector<8x32xf32>
    %21 = vector.broadcast %1 : vector<1x32xf32> to vector<8x32xf32>
    %22 = arith.mulf %20, %21 : vector<8x32xf32>
    %23 = vector.broadcast %2 : vector<1x32xf32> to vector<8x32xf32>
    %24 = arith.addf %22, %23 : vector<8x32xf32>
    %25 = arith.truncf %24 : vector<8x32xf32> to vector<8x32xbf16>
    %c0_9 = arith.constant 0 : index
    %c0_10 = arith.constant 0 : index
    %26 = vector.load %arg4[%c0_9, %c0_10] : memref<32x192xbf16, #tpu.memory_space<vmem>>, vector<32x192xbf16>
    %cst_11 = arith.constant dense<0.000000e+00> : vector<8x192xf32>
    %27 = tpu.matmul %25, %26, %cst_11 {dimension_numbers = #tpu.dot_dimension_numbers<[1], [0], [0], [1], [0, 0, 1, 1], [], []>} : vector<8x32xbf16>, vector<32x192xbf16>, vector<8x192xf32> -> vector<8x192xf32>
    %cst_12 = arith.constant 5.000000e-01 : f32
    %28 = vector.broadcast %cst_12 : f32 to vector<8x192xf32>
    %29 = arith.mulf %28, %27 : vector<8x192xf32>
    %cst_13 = arith.constant 4.471500e-02 : f32
    %30 = vector.broadcast %cst_13 : f32 to vector<8x192xf32>
    %31 = arith.mulf %30, %27 : vector<8x192xf32>
    %32 = arith.mulf %31, %27 : vector<8x192xf32>
    %33 = arith.mulf %32, %27 : vector<8x192xf32>
    %34 = arith.addf %27, %33 : vector<8x192xf32>
    %cst_14 = arith.constant 0.797884583 : f32
    %35 = vector.broadcast %cst_14 : f32 to vector<8x192xf32>
    %36 = arith.mulf %35, %34 : vector<8x192xf32>
    %37 = math.tanh %36 : vector<8x192xf32>
    %cst_15 = arith.constant 1.000000e+00 : f32
    %38 = vector.broadcast %cst_15 : f32 to vector<8x192xf32>
    %39 = arith.addf %38, %37 : vector<8x192xf32>
    %40 = arith.mulf %29, %39 : vector<8x192xf32>
    %41 = vector.extract_strided_slice %40 {offsets = [0, 0], sizes = [8, 128], strides = [1, 1]} : vector<8x192xf32> to vector<8x128xf32>
    %42 = vector.extract_strided_slice %40 {offsets = [0, 128], sizes = [8, 64], strides = [1, 1]} : vector<8x192xf32> to vector<8x64xf32>
    %c0_16 = arith.constant 0 : index
    %c0_17 = arith.constant 0 : index
    %43 = vector.load %arg5[%c0_16, %c0_17] : memref<1x64xf32, #tpu.memory_space<vmem>>, vector<1x64xf32>
    %c0_18 = arith.constant 0 : index
    %c0_19 = arith.constant 0 : index
    %44 = vector.load %arg6[%c0_18, %c0_19] : memref<1x64xf32, #tpu.memory_space<vmem>>, vector<1x64xf32>
    %cst_20 = arith.constant dense<0.000000e+00> : vector<8xf32>
    %45 = vector.multi_reduction <add>, %42, %cst_20 [1] : vector<8x64xf32> to vector<8xf32>
    %46 = vector.shape_cast %45 : vector<8xf32> to vector<8x1xf32>
    %cst_21 = arith.constant 6.400000e+01 : f32
    %47 = vector.broadcast %cst_21 : f32 to vector<8x1xf32>
    %48 = arith.divf %46, %47 : vector<8x1xf32>
    %49 = vector.broadcast %48 : vector<8x1xf32> to vector<8x64xf32>
    %50 = arith.subf %42, %49 : vector<8x64xf32>
    %51 = arith.mulf %50, %50 : vector<8x64xf32>
    %cst_22 = arith.constant dense<0.000000e+00> : vector<8xf32>
    %52 = vector.multi_reduction <add>, %51, %cst_22 [1] : vector<8x64xf32> to vector<8xf32>
    %53 = vector.shape_cast %52 : vector<8xf32> to vector<8x1xf32>
    %cst_23 = arith.constant 6.400000e+01 : f32
    %54 = vector.broadcast %cst_23 : f32 to vector<8x1xf32>
    %55 = arith.divf %53, %54 : vector<8x1xf32>
    %56 = vector.broadcast %48 : vector<8x1xf32> to vector<8x64xf32>
    %57 = arith.subf %42, %56 : vector<8x64xf32>
    %cst_24 = arith.constant 9.99999974E-6 : f32
    %58 = vector.broadcast %cst_24 : f32 to vector<8x1xf32>
    %59 = arith.addf %55, %58 : vector<8x1xf32>
    %60 = math.rsqrt %59 : vector<8x1xf32>
    %61 = vector.broadcast %60 : vector<8x1xf32> to vector<8x64xf32>
    %62 = arith.mulf %57, %61 : vector<8x64xf32>
    %63 = vector.broadcast %43 : vector<1x64xf32> to vector<8x64xf32>
    %64 = arith.mulf %62, %63 : vector<8x64xf32>
    %65 = vector.broadcast %44 : vector<1x64xf32> to vector<8x64xf32>
    %66 = arith.addf %64, %65 : vector<8x64xf32>
    %c0_25 = arith.constant 0 : index
    %c0_26 = arith.constant 0 : index
    %67 = vector.load %arg7[%c0_25, %c0_26] : memref<1x64xf32, #tpu.memory_space<vmem>>, vector<1x64xf32>
    %68 = vector.broadcast %67 : vector<1x64xf32> to vector<8x64xf32>
    %69 = arith.mulf %66, %68 : vector<8x64xf32>
    %70 = tpu.iota {dimensions = array<i32: 0>} : vector<8x64xi32>
    %c8_i32 = arith.constant 8 : i32
    %c0_i32 = arith.constant 0 : i32
    %71 = arith.cmpi eq, %c8_i32, %c0_i32 : i32
    %c1_i32 = arith.constant 1 : i32
    %72 = arith.select %71, %c1_i32, %c8_i32 : i32
    %73 = vector.broadcast %72 : i32 to vector<8x64xi32>
    %74 = arith.remsi %70, %73 : vector<8x64xi32>
    %c0_i32_27 = arith.constant 0 : i32
    %75 = vector.broadcast %c0_i32_27 : i32 to vector<8x64xi32>
    %76 = arith.cmpi ne, %74, %75 : vector<8x64xi32>
    %c0_i32_28 = arith.constant 0 : i32
    %77 = vector.broadcast %c0_i32_28 : i32 to vector<8x64xi32>
    %78 = arith.cmpi slt, %74, %77 : vector<8x64xi32>
    %c0_i32_29 = arith.constant 0 : i32
    %79 = arith.cmpi slt, %72, %c0_i32_29 : i32
    %80 = vector.broadcast %79 : i1 to vector<8x64xi1>
    %81 = vector.broadcast %80 : vector<8x64xi1> to vector<8x64xi1>
    %82 = arith.xori %78, %81 : vector<8x64xi1>
    %83 = arith.andi %82, %76 : vector<8x64xi1>
    %84 = vector.broadcast %72 : i32 to vector<8x64xi32>
    %85 = arith.addi %74, %84 : vector<8x64xi32>
    %86 = arith.select %83, %85, %74 : vector<8x64xi1>, vector<8x64xi32>
    %c0_30 = arith.constant 0 : index
    %c0_31 = arith.constant 0 : index
    %87 = vector.load %arg8[%c0_30, %c0_31] : memref<8x64xf32, #tpu.memory_space<vmem>>, vector<1x64xf32>
    %88 = vector.broadcast %87 : vector<1x64xf32> to vector<8x64xf32>
    %89 = arith.mulf %88, %66 : vector<8x64xf32>
    %c1_i32_32 = arith.constant 1 : i32
    %c1_i32_33 = arith.constant 1 : i32
    %90 = tpu.dynamic_rotate %66 by %c1_i32_33 dim 0 : vector<8x64xf32>, i32 -> vector<8x64xf32>
    %91 = arith.index_cast %c1_i32_32 : i32 to index
    %c0_34 = arith.constant 0 : index
    %92 = vector.load %arg8[%91, %c0_34] : memref<8x64xf32, #tpu.memory_space<vmem>>, vector<1x64xf32>
    %93 = vector.broadcast %c1_i32_32 : i32 to vector<8x64xi32>
    %94 = arith.cmpi sge, %86, %93 : vector<8x64xi32>
    %95 = vector.broadcast %92 : vector<1x64xf32> to vector<8x64xf32>
    %96 = arith.mulf %95, %90 : vector<8x64xf32>
    %cst_35 = arith.constant 0.000000e+00 : f32
    %97 = vector.broadcast %cst_35 : f32 to vector<8x64xf32>
    %98 = arith.select %94, %96, %97 : vector<8x64xi1>, vector<8x64xf32>
    %99 = arith.addf %89, %98 : vector<8x64xf32>
    %c2_i32 = arith.constant 2 : i32
    %c1_i32_36 = arith.constant 1 : i32
    %100 = tpu.dynamic_rotate %90 by %c1_i32_36 dim 0 : vector<8x64xf32>, i32 -> vector<8x64xf32>
    %101 = arith.index_cast %c2_i32 : i32 to index
    %c0_37 = arith.constant 0 : index
    %102 = vector.load %arg8[%101, %c0_37] : memref<8x64xf32, #tpu.memory_space<vmem>>, vector<1x64xf32>
    %103 = vector.broadcast %c2_i32 : i32 to vector<8x64xi32>
    %104 = arith.cmpi sge, %86, %103 : vector<8x64xi32>
    %105 = vector.broadcast %102 : vector<1x64xf32> to vector<8x64xf32>
    %106 = arith.mulf %105, %100 : vector<8x64xf32>
    %cst_38 = arith.constant 0.000000e+00 : f32
    %107 = vector.broadcast %cst_38 : f32 to vector<8x64xf32>
    %108 = arith.select %104, %106, %107 : vector<8x64xi1>, vector<8x64xf32>
    %109 = arith.addf %99, %108 : vector<8x64xf32>
    %c3_i32 = arith.constant 3 : i32
    %c1_i32_39 = arith.constant 1 : i32
    %110 = tpu.dynamic_rotate %100 by %c1_i32_39 dim 0 : vector<8x64xf32>, i32 -> vector<8x64xf32>
    %111 = arith.index_cast %c3_i32 : i32 to index
    %c0_40 = arith.constant 0 : index
    %112 = vector.load %arg8[%111, %c0_40] : memref<8x64xf32, #tpu.memory_space<vmem>>, vector<1x64xf32>
    %113 = vector.broadcast %c3_i32 : i32 to vector<8x64xi32>
    %114 = arith.cmpi sge, %86, %113 : vector<8x64xi32>
    %115 = vector.broadcast %112 : vector<1x64xf32> to vector<8x64xf32>
    %116 = arith.mulf %115, %110 : vector<8x64xf32>
    %cst_41 = arith.constant 0.000000e+00 : f32
    %117 = vector.broadcast %cst_41 : f32 to vector<8x64xf32>
    %118 = arith.select %114, %116, %117 : vector<8x64xi1>, vector<8x64xf32>
    %119 = arith.addf %109, %118 : vector<8x64xf32>
    %c4_i32 = arith.constant 4 : i32
    %c1_i32_42 = arith.constant 1 : i32
    %120 = tpu.dynamic_rotate %110 by %c1_i32_42 dim 0 : vector<8x64xf32>, i32 -> vector<8x64xf32>
    %121 = arith.index_cast %c4_i32 : i32 to index
    %c0_43 = arith.constant 0 : index
    %122 = vector.load %arg8[%121, %c0_43] : memref<8x64xf32, #tpu.memory_space<vmem>>, vector<1x64xf32>
    %123 = vector.broadcast %c4_i32 : i32 to vector<8x64xi32>
    %124 = arith.cmpi sge, %86, %123 : vector<8x64xi32>
    %125 = vector.broadcast %122 : vector<1x64xf32> to vector<8x64xf32>
    %126 = arith.mulf %125, %120 : vector<8x64xf32>
    %cst_44 = arith.constant 0.000000e+00 : f32
    %127 = vector.broadcast %cst_44 : f32 to vector<8x64xf32>
    %128 = arith.select %124, %126, %127 : vector<8x64xi1>, vector<8x64xf32>
    %129 = arith.addf %119, %128 : vector<8x64xf32>
    %c5_i32 = arith.constant 5 : i32
    %c1_i32_45 = arith.constant 1 : i32
    %130 = tpu.dynamic_rotate %120 by %c1_i32_45 dim 0 : vector<8x64xf32>, i32 -> vector<8x64xf32>
    %131 = arith.index_cast %c5_i32 : i32 to index
    %c0_46 = arith.constant 0 : index
    %132 = vector.load %arg8[%131, %c0_46] : memref<8x64xf32, #tpu.memory_space<vmem>>, vector<1x64xf32>
    %133 = vector.broadcast %c5_i32 : i32 to vector<8x64xi32>
    %134 = arith.cmpi sge, %86, %133 : vector<8x64xi32>
    %135 = vector.broadcast %132 : vector<1x64xf32> to vector<8x64xf32>
    %136 = arith.mulf %135, %130 : vector<8x64xf32>
    %cst_47 = arith.constant 0.000000e+00 : f32
    %137 = vector.broadcast %cst_47 : f32 to vector<8x64xf32>
    %138 = arith.select %134, %136, %137 : vector<8x64xi1>, vector<8x64xf32>
    %139 = arith.addf %129, %138 : vector<8x64xf32>
    %c6_i32 = arith.constant 6 : i32
    %c1_i32_48 = arith.constant 1 : i32
    %140 = tpu.dynamic_rotate %130 by %c1_i32_48 dim 0 : vector<8x64xf32>, i32 -> vector<8x64xf32>
    %141 = arith.index_cast %c6_i32 : i32 to index
    %c0_49 = arith.constant 0 : index
    %142 = vector.load %arg8[%141, %c0_49] : memref<8x64xf32, #tpu.memory_space<vmem>>, vector<1x64xf32>
    %143 = vector.broadcast %c6_i32 : i32 to vector<8x64xi32>
    %144 = arith.cmpi sge, %86, %143 : vector<8x64xi32>
    %145 = vector.broadcast %142 : vector<1x64xf32> to vector<8x64xf32>
    %146 = arith.mulf %145, %140 : vector<8x64xf32>
    %cst_50 = arith.constant 0.000000e+00 : f32
    %147 = vector.broadcast %cst_50 : f32 to vector<8x64xf32>
    %148 = arith.select %144, %146, %147 : vector<8x64xi1>, vector<8x64xf32>
    %149 = arith.addf %139, %148 : vector<8x64xf32>
    %c7_i32 = arith.constant 7 : i32
    %c1_i32_51 = arith.constant 1 : i32
    %150 = tpu.dynamic_rotate %140 by %c1_i32_51 dim 0 : vector<8x64xf32>, i32 -> vector<8x64xf32>
    %151 = arith.index_cast %c7_i32 : i32 to index
    %c0_52 = arith.constant 0 : index
    %152 = vector.load %arg8[%151, %c0_52] : memref<8x64xf32, #tpu.memory_space<vmem>>, vector<1x64xf32>
    %153 = vector.broadcast %c7_i32 : i32 to vector<8x64xi32>
    %154 = arith.cmpi sge, %86, %153 : vector<8x64xi32>
    %155 = vector.broadcast %152 : vector<1x64xf32> to vector<8x64xf32>
    %156 = arith.mulf %155, %150 : vector<8x64xf32>
    %cst_53 = arith.constant 0.000000e+00 : f32
    %157 = vector.broadcast %cst_53 : f32 to vector<8x64xf32>
    %158 = arith.select %154, %156, %157 : vector<8x64xi1>, vector<8x64xf32>
    %159 = arith.addf %149, %158 : vector<8x64xf32>
    %c7_i32_54 = arith.constant 7 : i32
    %160 = arith.addf %159, %69 : vector<8x64xf32>
    %161 = arith.truncf %160 : vector<8x64xf32> to vector<8x64xbf16>
    %c0_55 = arith.constant 0 : index
    %c0_56 = arith.constant 0 : index
    %162 = vector.load %arg9[%c0_55, %c0_56] : memref<64x128xbf16, #tpu.memory_space<vmem>>, vector<64x128xbf16>
    %cst_57 = arith.constant dense<0.000000e+00> : vector<8x128xf32>
    %163 = tpu.matmul %161, %162, %cst_57 {dimension_numbers = #tpu.dot_dimension_numbers<[1], [0], [0], [1], [0, 0, 1, 1], [], []>} : vector<8x64xbf16>, vector<64x128xbf16>, vector<8x128xf32> -> vector<8x128xf32>
    %164 = arith.mulf %163, %41 : vector<8x128xf32>
    %165 = arith.truncf %164 : vector<8x128xf32> to vector<8x128xbf16>
    %c0_58 = arith.constant 0 : index
    %c0_59 = arith.constant 0 : index
    %166 = vector.load %arg10[%c0_58, %c0_59] : memref<128x32xbf16, #tpu.memory_space<vmem>>, vector<128x32xbf16>
    %cst_60 = arith.constant dense<0.000000e+00> : vector<8x32xf32>
    %167 = tpu.matmul %165, %166, %cst_60 {dimension_numbers = #tpu.dot_dimension_numbers<[1], [0], [0], [1], [0, 0, 1, 1], [], []>} : vector<8x128xbf16>, vector<128x32xbf16>, vector<8x32xf32> -> vector<8x32xf32>
    %c0_61 = arith.constant 0 : index
    %c0_62 = arith.constant 0 : index
    %168 = vector.load %arg11[%c0_61, %c0_62] : memref<1x32xf32, #tpu.memory_space<vmem>>, vector<1x32xf32>
    %169 = vector.broadcast %168 : vector<1x32xf32> to vector<8x32xf32>
    %170 = arith.addf %167, %169 : vector<8x32xf32>
    %171 = arith.addf %170, %0 : vector<8x32xf32>
    %c0_63 = arith.constant 0 : index
    %c0_64 = arith.constant 0 : index
    %172 = vector.load %arg12[%c0_63, %c0_64] : memref<8x32xf32, #tpu.memory_space<vmem>>, vector<8x32xf32>
    tpu.vector_store %arg12[%c0_63, %c0_64], %171 {strides = array<i32>} : memref<8x32xf32, #tpu.memory_space<vmem>>, vector<8x32xf32>,
    return
  }
  func.func @transform_0(%arg0: i32) -> (i32, i32) {
    %c0_i32 = arith.constant 0 : i32
    %c0_i32_0 = arith.constant 0 : i32
    return %arg0, %c0_i32 : i32, i32
  }
  func.func @transform_1(%arg0: i32) -> (i32, i32) {
    %c0_i32 = arith.constant 0 : i32
    %c0_i32_0 = arith.constant 0 : i32
    %c0_i32_1 = arith.constant 0 : i32
    return %c0_i32, %c0_i32_0 : i32, i32
  }
  func.func @transform_2(%arg0: i32) -> (i32, i32) {
    %c0_i32 = arith.constant 0 : i32
    %c0_i32_0 = arith.constant 0 : i32
    %c0_i32_1 = arith.constant 0 : i32
    return %c0_i32, %c0_i32_0 : i32, i32
  }
  func.func @transform_3(%arg0: i32) -> (i32, i32) {
    %c0_i32 = arith.constant 0 : i32
    %c0_i32_0 = arith.constant 0 : i32
    %c0_i32_1 = arith.constant 0 : i32
    return %c0_i32, %c0_i32_0 : i32, i32
  }
  func.func @transform_4(%arg0: i32) -> (i32, i32) {
    %c0_i32 = arith.constant 0 : i32
    %c0_i32_0 = arith.constant 0 : i32
    %c0_i32_1 = arith.constant 0 : i32
    return %c0_i32, %c0_i32_0 : i32, i32
  }
  func.func @transform_5(%arg0: i32) -> (i32, i32) {
    %c0_i32 = arith.constant 0 : i32
    %c0_i32_0 = arith.constant 0 : i32
    %c0_i32_1 = arith.constant 0 : i32
    return %c0_i32, %c0_i32_0 : i32, i32
  }
  func.func @transform_6(%arg0: i32) -> (i32, i32) {
    %c0_i32 = arith.constant 0 : i32
    %c0_i32_0 = arith.constant 0 : i32
    %c0_i32_1 = arith.constant 0 : i32
    return %c0_i32, %c0_i32_0 : i32, i32
  }
  func.func @transform_7(%arg0: i32) -> (i32, i32) {
    %c0_i32 = arith.constant 0 : i32
    %c0_i32_0 = arith.constant 0 : i32
    %c0_i32_1 = arith.constant 0 : i32
    return %c0_i32, %c0_i32_0 : i32, i32
  }
  func.func @transform_8(%arg0: i32) -> (i32, i32) {
    %c0_i32 = arith.constant 0 : i32
    %c0_i32_0 = arith.constant 0 : i32
    %c0_i32_1 = arith.constant 0 : i32
    return %c0_i32, %c0_i32_0 : i32, i32
  }
  func.func @transform_9(%arg0: i32) -> (i32, i32) {
    %c0_i32 = arith.constant 0 : i32
    %c0_i32_0 = arith.constant 0 : i32
    %c0_i32_1 = arith.constant 0 : i32
    return %c0_i32, %c0_i32_0 : i32, i32
  }
  func.func @transform_10(%arg0: i32) -> (i32, i32) {
    %c0_i32 = arith.constant 0 : i32
    %c0_i32_0 = arith.constant 0 : i32
    %c0_i32_1 = arith.constant 0 : i32
    return %c0_i32, %c0_i32_0 : i32, i32
  }
  func.func @transform_11(%arg0: i32) -> (i32, i32) {
    %c0_i32 = arith.constant 0 : i32
    %c0_i32_0 = arith.constant 0 : i32
    return %arg0, %c0_i32 : i32, i32
  }
}

</mosaic_0001>

<bundles_post_ra>
// kernel: tpu_custom_call.1
= control target key start
LH: loop header
LB: loop body
LE: loop exit
PB: predicated region body
PF: predicated region fallthrough
CT: control target
= control target key end

     0   :  { %s1821_s0 = inlined_call_operand.vmem [shape: f32[16,32], index: 0, kind: input, shape index: {}]   ;;  %s1822_s1 = inlined_call_operand.hbm [shape: f32[1,32], index: 1, kind: input, shape index: {}]   ;;  %s1823_s2 = inlined_call_operand.hbm [shape: f32[1,32], index: 2, kind: input, shape index: {}]   ;;  %s1824_s3 = inlined_call_operand.vmem [shape: bf16[32,192], index: 3, kind: input, shape index: {}]   ;;  %s1825_s4 = inlined_call_operand.hbm [shape: f32[1,64], index: 4, kind: input, shape index: {}]   ;;  %s1826_s5 = inlined_call_operand.hbm [shape: f32[1,64], index: 5, kind: input, shape index: {}]   ;;  %s1827_s6 = inlined_call_operand.hbm [shape: f32[1,64], index: 6, kind: input, shape index: {}]   ;;  %s1828_s7 = inlined_call_operand.hbm [shape: f32[8,64], index: 7, kind: input, shape index: {}]   ;;  %s1829_s8 = inlined_call_operand.vmem [shape: bf16[64,128], index: 8, kind: input, shape index: {}]   ;;  %s1830_s9 = inlined_call_operand.vmem [shape: bf16[128,32], index: 9, kind: input, shape index: {}]   ;;  %s1831_s10 = inlined_call_operand.vmem [shape: f32[1,32], index: 10, kind: input, shape index: {}]   ;;  %s1832_s11 = inlined_call_operand.hbm [shape: f32[16,32], index: 11, kind: output, shape index: {}]  }
   0x1   :  { %1837 = sst [smem:[#allocation21_spill]] %s1823_s2 }
   0x2   :  { %16 = vsyncpa [#allocation3], 0 }
   0x3   :  { %17 = vsyncpa [#allocation6], 0 }
   0x4   :  { %18 = vsyncpa [#allocation9], 0 }
   0x5   :  { %19 = vsyncpa [#allocation12], 0 }
   0x6   :  { %20 = vsyncpa [#allocation4], 0 }
   0x7   :  { %22 = vsyncpa [#allocation4 + $0x1], 0  ;;  %s1565_s17 = smov 0   ;;  %s1567_s18 = smov 0  }
   0x8   :  { %s1569_s19 = smov 0   ;;  %s1571_s20 = smov 0  }
   0x9 LB: > { %1838 = sst [smem:[#allocation19_spill]] %s1489_s19  ;;  %s1586_s21 = sadd.s32 4294967295, %s1493_s20   ;;  %s1493_s20 = sphi %s1571_s20, %s1861_s20   ;;  %s1489_s19 = sphi %s1569_s19, %s1858_s19   ;;  %s1485_s18 = sphi %s1567_s18, %s1860_s18   ;;  %s1481_s17 = sphi %s1565_s17, %s1859_s17  }
   0xa   : > { %s1032_s22 = sadd.s32 4294967294, %s1493_s20   ;;  %s1590_s23 = sadd.s32 1, %s1493_s20  }
   0xb   : > { %s271_s24 = sadd.s32 1, %s1489_s19  ;;  %s268_s25 = ssub.s32 %s1493_s20, %s1590_s23 }
   0xc   : > { %p281_p0 = scmp.ne.s32.totalorder %s1489_s19, %s1485_s18  ;;  %p269_p1 = scmp.eq.s32.totalorder %s268_s25, 0 }
   0xd   : > { %p282_p2 = scmp.eq.s32.totalorder %s1586_s21, 1  ;;  %p287_p3 = scmp.ne.s32.totalorder %s1485_s18, %s1481_s17 }
   0xe   : > { %p288_p4 = scmp.eq.s32.totalorder %s1032_s22, 1  ;;  %p1033_p7 = scmp.ge.s32.totalorder %s1493_s20, 1 }
   0xf   : > { %s1601_s26 = scalar_select %p269_p1, %s1489_s19, %s271_s24  }
  0x10   : > { %p1603_p5 = por %p282_p2, %p281_p0  ;;  %p1607_p6 = por %p288_p4, %p287_p3 }
  0x11   : > { %1839 = sst [smem:[#allocation20_spill]] %s1601_s26  ;;  %p295_p8 = scmp.lt.s32.totalorder %s1493_s20, 3 }
  0x12   : > { %s1840_s27 = scalar_select %p1603_p5, 1, 0 }
  0x13   : > { %s1841_s28 = scalar_select %p1607_p6, 1, 0 }
  0x14   : > { %p1833_p9 = scmp.eq.s32.totalorder %s1586_s21, 0  ;;  %p1614_p10 = pnand %p1033_p7, %p295_p8 }
  0x15   : > { %s1495_s30 = smov [#allocation5]   ;;  %s1496_s13 = smov [#allocation8]  }
  0x16   : > { %s1842_s29 = scalar_select %p1614_p10, 1, 0 }
  0x17   : > { %s319_s12 = sshll.u32 %s1495_s30, 4  ;;  %p1158_p11 = pneg %p1614_p10  ;;  %s320_s12 = int_to_ptr.vmem [resolvable:$true] %s319_s12 }
  0x18   : > { %s344_s14 = sshll.u32 %s1496_s13, 4  ;;  %s1497_s16 = smov [#allocation2]   ;;  %s345_s14 = int_to_ptr.vmem [resolvable:$true] %s344_s14 }
  0x19   : > { %p1622_p12 = pnand %p1833_p9, %p1158_p11  ;;  %s308_s22 = sshll.u32 %s1497_s16, 4  ;;  %s1626_s22 = int_to_ptr.vmem [resolvable:$true] %s308_s22 }
  0x1a   : > { %s1272_s25 = scalar_lea.vmem %s320_s12, 16  ;;  %s1279_s30 = scalar_lea.vmem %s320_s12, 32 }
  0x1b   : > { %p1630_p13 = pneg %p1622_p12  ;;  %p1273_p0 = scmp.ne.s32.totalorder %s320_s12, %s1272_s25 }
  0x1c   : > { %p1280_p3 = scmp.lt.s32.totalorder %s320_s12, %s320_s12  ;;  %p1281_p4 = scmp.lt.s32.totalorder %s1279_s30, %s1272_s25 }
  0x1d   : > { %p1275_p1 = pnand %p1273_p0, %p1630_p13 }
  0x1e   : > { %p1282_p7 = por %p1281_p4, %p1280_p3 }
  0x1f   : > { %p1276_p2 = pneg %p1275_p1 }
  0x21   : > { %p1283_p8 = pnand %p1282_p7, %p1276_p2 }
  0x23   : > { %1286 = shalt.err (!%p1283_p8)
}
  0x24   : > { %s1845_s2 = sld [smem:[#allocation21_spill]]  ;;  %s1298_s26 = scalar_lea.vmem %s345_s14, 16 }
  0x25   : > { %p1299_p11 = scmp.ne.s32.totalorder %s345_s14, %s1298_s26  ;;  %s1305_s19 = scalar_lea.vmem %s345_s14, 32 }
  0x26   : > { %p1306_p0 = scmp.lt.s32.totalorder %s345_s14, %s345_s14  ;;  %p1307_p1 = scmp.lt.s32.totalorder %s1305_s19, %s1298_s26 }
  0x27   : > { %p1301_p9 = pnand %p1299_p11, %p1630_p13 }
  0x28   : > { %p1308_p5 = por %p1307_p1, %p1306_p0 }
  0x29   : > { %p1302_p6 = pneg %p1301_p9 }
  0x2a   : > { %1164 = dma.hbm_to_vmem [thread:$0]  (!%p1622_p12), %s1845_s2, 16, %s320_s12, [#allocation6]  }
  0x2b   : > { %p1309_p10 = pnand %p1308_p5, %p1302_p6 }
  0x2d   : > { %1312 = shalt.err (!%p1309_p10)
}
  0x2e   : > { %1170 = dma.hbm_to_vmem [thread:$0]  (!%p1622_p12), %s1826_s5, 16, %s345_s14, [#allocation9]  }
  0x2f   : > { %s1324_s12 = scalar_lea.vmem %s1626_s22, 16  ;;  %s1331_s19 = scalar_lea.vmem %s1626_s22, 32 }
  0x30   : > { %p1325_p2 = scmp.ne.s32.totalorder %s1626_s22, %s1324_s12  ;;  %p1332_p5 = scmp.lt.s32.totalorder %s1626_s22, %s1626_s22 }
  0x31   : > { %p1333_p6 = scmp.lt.s32.totalorder %s1331_s19, %s1324_s12 }
  0x32   : > { %p1327_p9 = pnand %p1325_p2, %p1630_p13 }
  0x33   : > { %p1334_p10 = por %p1333_p6, %p1332_p5 }
  0x34   : > { %p1328_p3 = pneg %p1327_p9 }
  0x36   : > { %p1335_p4 = pnand %p1334_p10, %p1328_p3 }
  0x38   : > { %1338 = shalt.err (!%p1335_p4)
}
  0x39   : > { %1161 = dma.hbm_to_vmem [thread:$0]  (!%p1622_p12), %s1822_s1, 16, %s1626_s22, [#allocation3]  }
  0x3a   : > { %s1498_s14 = smov [#allocation7]   ;;  %s1499_s25 = smov [#allocation10]  }
  0x3b   : > { %s333_s16 = sshll.u32 %s1498_s14, 4  ;;  %s355_s30 = sshll.u32 %s1499_s25, 4  ;;  %s334_s16 = int_to_ptr.vmem [resolvable:$true] %s333_s16  ;;  %s356_s30 = int_to_ptr.vmem [resolvable:$true] %s355_s30 }
  0x3c   : > { %s1350_s2 = scalar_lea.vmem %s334_s16, 16  ;;  %s1357_s12 = scalar_lea.vmem %s334_s16, 32 }
  0x3d   : > { %p1351_p7 = scmp.ne.s32.totalorder %s334_s16, %s1350_s2  ;;  %p1358_p0 = scmp.lt.s32.totalorder %s334_s16, %s334_s16 }
  0x3e   : > { %p1359_p1 = scmp.lt.s32.totalorder %s1357_s12, %s1350_s2 }
  0x3f   : > { %p1353_p8 = pnand %p1351_p7, %p1630_p13 }
  0x40   : > { %p1360_p2 = por %p1359_p1, %p1358_p0 }
  0x41   : > { %p1354_p11 = pneg %p1353_p8 }
  0x43   : > { %p1361_p9 = pnand %p1360_p2, %p1354_p11 }
  0x45   : > { %1364 = shalt.err (!%p1361_p9)
}
  0x46   : > { %1167 = dma.hbm_to_vmem [thread:$0]  (!%p1622_p12), %s1825_s4, 16, %s334_s16, [#allocation6]  }
  0x47   : > { %s1376_s26 = scalar_lea.vmem %s356_s30, 16  ;;  %s1383_s13 = scalar_lea.vmem %s356_s30, 32 }
  0x48   : > { %p1377_p3 = scmp.ne.s32.totalorder %s356_s30, %s1376_s26  ;;  %p1384_p10 = scmp.lt.s32.totalorder %s356_s30, %s356_s30 }
  0x49   : > { %p1385_p4 = scmp.lt.s32.totalorder %s1383_s13, %s1376_s26 }
  0x4a   : > { %p1379_p5 = pnand %p1377_p3, %p1630_p13 }
  0x4b   : > { %p1386_p7 = por %p1385_p4, %p1384_p10 }
  0x4c   : > { %p1380_p6 = pneg %p1379_p5 }
  0x4e   : > { %p1387_p8 = pnand %p1386_p7, %p1380_p6 }
  0x50   : > { %1390 = shalt.err (!%p1387_p8)
}
  0x51   : > { %1173 = dma.hbm_to_vmem [thread:$0]  (!%p1622_p12), %s1827_s6, 16, %s356_s30, [#allocation9]  }
  0x52   : > { %s1500_s16 = smov [#allocation11]  }
  0x53   : > { %s366_s25 = sshll.u32 %s1500_s16, 4  ;;  %s367_s25 = int_to_ptr.vmem [resolvable:$true] %s366_s25 }
  0x54   : > { %s1402_s12 = scalar_lea.vmem %s367_s25, 128  ;;  %p1410_p2 = scmp.lt.s32.totalorder %s367_s25, %s367_s25 }
  0x55   : > { %p1403_p11 = scmp.ne.s32.totalorder %s367_s25, %s1402_s12  ;;  %p1411_p9 = scmp.lt.s32.totalorder %s1402_s12, %s1402_s12 }
  0x57   : > { %p1405_p0 = pnand %p1403_p11, %p1630_p13  ;;  %p1412_p3 = por %p1411_p9, %p1410_p2 }
  0x59   : > { %p1406_p1 = pneg %p1405_p0 }
  0x5b   : > { %p1413_p5 = pnand %p1412_p3, %p1406_p1 }
  0x5d   : > { %1416 = shalt.err (!%p1413_p5)
}
  0x5e   : > { %1176 = dma.hbm_to_vmem [thread:$0]  (!%p1622_p12), %s1828_s7, 128, %s367_s25, [#allocation12]  }
  0x5f   : > { %p1846_p6 = scmp.ne.s32.totalorder %s1842_s29, 0 }
  0x60   : > { %p1847_p10 = scmp.eq.s32.totalorder (!%p1846_p6), %s1586_s21, 0 }
  0x61   : > { %395 = sbr.rel (%p1846_p6) target bundleno = 1391 (0x56f), region = 64 }
  0x66   : > { %1460 = dma.done.wait (%p1847_p10), [#allocation3], 16   ;;  %p1848_p13 = pmov %p1847_p10 }
  0x67   : > { %p1849_p4 = pmov %p1847_p10 }
  0x68   : > { %1462 = vsyncadd (%p1848_p13), [#allocation3], 4294967280 }
  0x69   : > { %1464 = dma.done.wait (%p1849_p4), [#allocation6], 32   ;;  %p1850_p7 = pmov %p1849_p4 }
  0x6a   : > { %p1851_p8 = pmov %p1849_p4 }
  0x6b   : > { %1466 = vsyncadd (%p1850_p7), [#allocation6], 4294967264 }
  0x6c   : > { %1468 = dma.done.wait (%p1851_p8), [#allocation9], 32   ;;  %p1852_p12 = pmov %p1849_p4 }
  0x6d   : > { %p1853_p11 = pmov %p1849_p4 }
  0x6e   : > { %1470 = vsyncadd (%p1852_p12), [#allocation9], 4294967264 }
  0x6f   : > { %1472 = dma.done.wait (%p1853_p11), [#allocation12], 128   ;;  %p1854_p0 = pmov %p1849_p4 }
  0x70   : > { %p454_p1 = scmp.lt.s32.totalorder %s1586_s21, 1  ;;  %vm462_vm0 = vcmask 261120   ;;  %v1235_v7 = vld [vmem:[%s1824_s3 + $0x14] ss:$8 sps:$4 sm:$0xff]   ;;  %v1237_v8 = vld [vmem:[%s1824_s3 + $0x10] ss:$8 sps:$4 sm:$0xff]   ;;  %v617_v56 = vlaneseq }
  0x71   : > { %1474 = vsyncadd (%p1854_p0), [#allocation12], 4294967168  ;;  %v1238_v9 = vld [vmem:[%s1824_s3 + $0x4] ss:$8 sps:$4 sm:$0xff]   ;;  %531 = vmatprep.subr.bf16.mxu1 %v1235_v7  ;;  %v1501_v10 = vmov 0   ;;  %vm580_vm1 = vcmask 523264  }
  0x72   : > { %s455_s29 = scalar_select %p454_p1, %s1586_s21, 1  ;;  %551 = vmatprep.mubr.bf16.mxu1 %v1501_v10  ;;  %532 = vmatpush1.bf16.msra.mxu1 %v1237_v8  ;;  %v1240_v11 = vld [vmem:[%s1824_s3] ss:$8 sps:$4 sm:$0xff]   ;;  %v1241_v41 = vld [vmem:[%s1829_s8 + $0x18] sm:$0xff]   ;;  %v1502_v42 = vmov 0.0   ;;  %vm1503_vm2 = vmmov 0  }
  0x73   : > { %533 = vmatprep.subr.bf16.mxu1 %v1238_v9  ;;  %v1050_v16 = vld [vmem:[#allocation2] ss:$0 sm:$0xff]  ;;  %v1051_v18 = vld [vmem:[#allocation5] ss:$0 sm:$0xff]  ;;  %v1242_v43 = vld [vmem:[%s1829_s8 + $0x10] sm:$0xff]   ;;  %1112 = vmatprep.subr.bf16.mxu0 %v1502_v42  ;;  %v618_v59 = vshrl.u32 %v617_v56, 7 }
  0x74   : > { %s1049_s15 = sshll.u32 %s455_s29, 3  ;;  %1128 = vmatprep.mubr.msk.bf16.mxu0 %vm1503_vm2, %v1502_v42  ;;  %v1243_v44 = vld [vmem:[%s1829_s8 + $0x8] sm:$0xff]   ;;  %v1244_v45 = vld [vmem:[%s1829_s8] sm:$0xff]   ;;  %v1245_v46 = vld [vmem:[%s1830_s9 + $0x38] sm:$0xff]   ;;  %s451_s19 = sand.u32 1, %s1485_s18  }
  0x75   : > { %s457_s26 = scalar_lea.vmem %s1821_s0, %s1049_s15  ;;  %1113 = vmatpush3.bf16.msra.mxu0 %v1245_v46  ;;  %v1246_v47 = vld [vmem:[%s1830_s9 + $0x30] sm:$0xff]   ;;  %v1247_v48 = vld [vmem:[%s1830_s9 + $0x28] sm:$0xff]   ;;  %v1248_v49 = vld [vmem:[%s1830_s9 + $0x20] sm:$0xff]   ;;  %v623_v63 = vand.u32 7, %v618_v59  ;;  %s1048_s22 = sshll.u32 %s451_s19, 3 }
  0x76   : > { %v1705_v0 = vld [vmem:[%s457_s26] sm:$0xff]  ;;  %534 = vmatpush1.bf16.msra.mxu1 %v1240_v11  ;;  %1114 = vmatprep.subr.bf16.mxu0 %v1502_v42  ;;  %v1249_v50 = vld [vmem:[%s1830_s9 + $0x18] sm:$0xff]   ;;  %v1250_v51 = vld [vmem:[%s1830_s9 + $0x10] sm:$0xff]   ;;  %s1083_s24 = sshll.u32 %s1586_s21, 7  ;;  %s453_s30 = scalar_lea.vmem [#allocation13], %s1048_s22 }
  0x77   : > { %v463_v1 = vsel %vm462_vm0, %v1705_v0, 0.0  ;;  %1100 = vmatprep.subr.bf16.mxu1 %v1502_v42  ;;  %v1251_v52 = vld [vmem:[%s1830_s9 + $0x8] sm:$0xff]   ;;  %v1057_v58 = vld [vmem:[#allocation7] ss:$0 sm:$0xff]  ;;  %v1058_v61 = vld [vmem:[#allocation8] ss:$0 sm:$0xff]  ;;  %s1779_s14 = scalar_lea.hbm %s1832_s11, %s1083_s24 }
  0x78   : > { %464 = vadd.xlane.f32.xlu0 %v463_v1  ;;  %vm639_vm3 = vcmp.ge.s32.totalorder %v623_v63, 1  ;;  %vm649_vm4 = vcmp.ge.s32.totalorder %v623_v63, 2  ;;  %v1063_v9 = vld [vmem:[#allocation11 + $0x3] ss:$0 sm:$0xff]  ;;  %vm659_vm5 = vcmp.ge.s32.totalorder %v623_v63, 3  ;;  %vm669_vm6 = vcmp.ge.s32.totalorder %v623_v63, 4 }
  0x79   : > { %1115 = vmatpush3.bf16.msra.mxu0 %v1246_v47  ;;  %vm679_vm7 = vcmp.ge.s32.totalorder %v623_v63, 5  ;;  %vm689_vm8 = vcmp.ge.s32.totalorder %v623_v63, 6  ;;  %vm699_vm9 = vcmp.ge.s32.totalorder %v623_v63, 7  ;;  %s913_s26 = sshll.u32 %s453_s30, 4  ;;  %s900_s21 = scalar_lea.sflag [#allocation4], %s451_s19  ;;  %s1781_s26 = int_to_ptr.vmem [resolvable:$true] %s913_s26 }
  0x7a   : > { %1116 = vmatprep.subr.bf16.mxu0 %v1502_v42  ;;  %s1417_s16 = scalar_lea.vmem %s1781_s26, 128  ;;  %p1855_p9 = scmp.ne.s32.totalorder %s1840_s27, 0 }
  0x7b   : > { %p1418_p2 = scmp.ne.s32.totalorder %s1781_s26, %s1417_s16  ;;  %s1504_s25 = smov [#allocation13]  }
  0x7c   : > { %s1421_s12 = sshll.u32 %s1504_s25, 4  ;;  %s1422_s12 = int_to_ptr.vmem [resolvable:$false] %s1421_s12 }
  0x7d   : > { %1117 = vmatpush3.bf16.msra.mxu0 %v1247_v48  ;;  %p1419_p3 = pnand %p1418_p2, %p1855_p9  ;;  %s1423_s22 = scalar_lea.vmem %s1422_s12, 256 }
  0x7e   : > { %1118 = vmatprep.subr.bf16.mxu0 %v1502_v42  ;;  %p1424_p6 = scmp.lt.s32.totalorder %s1781_s26, %s1422_s12  ;;  %p1425_p10 = scmp.lt.s32.totalorder %s1423_s22, %s1417_s16 }
  0x7f   : > { %p1420_p5 = pneg %p1419_p3 }
  0x80   : > { %p1426_p13 = por %p1425_p10, %p1424_p6 }
  0x81   : > { %1119 = vmatpush3.bf16.msra.mxu0 %v1248_v49 }
  0x82   : > { %1120 = vmatprep.subr.bf16.mxu0 %v1502_v42  ;;  %p1427_p4 = pnand %p1426_p13, %p1420_p5 }
  0x85   : > { %1121 = vmatpush3.bf16.msra.mxu0 %v1249_v50 }
  0x86   : > { %1122 = vmatprep.subr.bf16.mxu0 %v1502_v42 }
  0x89   : > { %1123 = vmatpush3.bf16.msra.mxu0 %v1250_v51 }
  0x8a   : > { %1124 = vmatprep.subr.bf16.mxu0 %v1502_v42 }
  0x8d   : > { %1125 = vmatpush3.bf16.msra.mxu0 %v1251_v52 }
  0x8e   : > { %1126 = vmatprep.subr.bf16.mxu0 %v1502_v42 }
 0x101   : > { %v465_v2 = vpop.xlane.xlu0 %464 }
 0x102   : > { %v467_v3 = vmul.f32 0.03125, %v465_v2  ;;  %v1061_v2 = vld [vmem:[#allocation11 + $0x1] ss:$0 sm:$0xff] }
 0x104   : > { %v468_v4 = vsub.f32 %v1705_v0, %v467_v3  ;;  %v1060_v3 = vld [vmem:[#allocation11] ss:$0 sm:$0xff] }
 0x106   : > { %v469_v5 = vmul.f32 %v468_v4, %v468_v4 }
 0x108   : > { %v470_v6 = vsel %vm462_vm0, %v469_v5, 0.0  ;;  %v1062_v5 = vld [vmem:[#allocation11 + $0x2] ss:$0 sm:$0xff] }
 0x109   : > { %471 = vadd.xlane.f32.xlu0 %v470_v6 }
 0x192   : > { %v472_v12 = vpop.xlane.xlu0 %471 }
 0x193   : > { %v473_v13 = vmul.f32 0.03125, %v472_v12 }
 0x195   : > { %v474_v14 = vadd.f32 1e-05, %v473_v13 }
 0x197   : > { %1253 = vrsqrt.f32 %v474_v14  ;;  %v1064_v14 = vld [vmem:[#allocation11 + $0x4] ss:$0 sm:$0xff] }
 0x1a4   : > { %v1254_v15 = vpop.eup %1253 }
 0x1a5   : > { %v476_v17 = vmul.f32 %v1254_v15, %v468_v4 }
 0x1a7   : > { %v483_v19 = vmul.f32 %v1050_v16, %v476_v17 }
 0x1a9   : > { %v490_v20 = vadd.f32 %v1051_v18, %v483_v19  ;;  %v1065_v19 = vld [vmem:[#allocation11 + $0x5] ss:$0 sm:$0xff] }
 0x1ab   : > { %v491_v21 = vpack.c.bf16 %v490_v20, %v490_v20 }
 0x1ad   : > { %1056 = vmatmul.mubr.msk.bf16.vlgmr.msra.gmra.mxu1 %vm462_vm0, %v491_v21 }
 0x1ae   : > { %1108 = vmatprep.mubr.msk.bf16.mxu1 %vm1503_vm2, %v1502_v42  ;;  %1101 = vmatpush3.bf16.msra.mxu1 %v1241_v41 }
 0x1af   : > { %1102 = vmatprep.subr.bf16.mxu1 %v1502_v42 }
 0x1b2   : > { %1103 = vmatpush3.bf16.msra.mxu1 %v1242_v43 }
 0x1b3   : > { %1104 = vmatprep.subr.bf16.mxu1 %v1502_v42 }
 0x1b6   : > { %1105 = vmatpush3.bf16.msra.mxu1 %v1243_v44  ;;  %v1252_v44 = vld [vmem:[%s1830_s9] sm:$0xff]  }
 0x1b7   : > { %1106 = vmatprep.subr.bf16.mxu1 %v1502_v42  ;;  %1127 = vmatpush3.bf16.msra.mxu0 %v1252_v44 }
 0x1ba   : > { %1107 = vmatpush3.bf16.msra.mxu1 %v1244_v45 }
 0x26d   : > { %v1724_v22 = vpop.f32.mrf.mxu1 }
 0x26e   : > { %v562_v45 = vmul.f32 0.044715, %v1724_v22  ;;  %v560_v52 = vmul.f32 0.5, %v1724_v22 }
 0x26f   : > { %v555_v23 = vpop.f32.mrf.mxu1 }
 0x270   : > { %v563_v24 = vmul.f32 0.044715, %v555_v23  ;;  %v561_v32 = vmul.f32 0.5, %v555_v23  ;;  %v564_v46 = vmul.f32 %v562_v45, %v1724_v22 }
 0x271   : > { %v557_v25 = vpop.f32.mrf.mxu1 }
 0x272   : > { %v565_v26 = vmul.f32 %v563_v24, %v555_v23  ;;  %v1066_v25 = vld [vmem:[#allocation11 + $0x6] ss:$0 sm:$0xff]  ;;  %v566_v47 = vmul.f32 %v564_v46, %v1724_v22 }
 0x273   : > { %v558_v27 = vpop.f32.mrf.mxu1 }
 0x274   : > { %v567_v28 = vmul.f32 %v565_v26, %v555_v23  ;;  %v568_v48 = vadd.f32 %v566_v47, %v1724_v22 }
 0x276   : > { %v569_v29 = vadd.f32 %v567_v28, %v555_v23  ;;  %v570_v49 = vmul.f32 0.7978846, %v568_v48 }
 0x278   : > { %v571_v30 = vmul.f32 0.7978846, %v569_v29 }
 0x27a   : > { %1255 = vtanh.f32 %v571_v30  ;;  %v1067_v30 = vld [vmem:[#allocation11 + $0x7] ss:$0 sm:$0xff] }
 0x287   : > { %v1256_v31 = vpop.eup %1255 }
 0x288   : > { %v575_v33 = vadd.f32 1.0, %v1256_v31 }
 0x28a   : > { %v577_v34 = vmul.f32 %v575_v33, %v561_v32 }
 0x28c   : > { %v581_v35 = vsel %vm580_vm1, %v577_v34, 0.0 }
 0x28d   : > { %582 = vadd.xlane.f32.xlu1 %v581_v35  ;;  %v1059_v35 = vld [vmem:[#allocation10] ss:$0 sm:$0xff] }
 0x316   : > { %v583_v36 = vpop.xlane.xlu1 %582 }
 0x317   : > { %v585_v37 = vmul.f32 0.015625, %v583_v36 }
 0x319   : > { %v586_v38 = vsub.f32 %v577_v34, %v585_v37 }
 0x31b   : > { %v587_v39 = vmul.f32 %v586_v38, %v586_v38 }
 0x31d   : > { %v588_v40 = vsel %vm580_vm1, %v587_v39, 0.0 }
 0x31e   : > { %589 = vadd.xlane.f32.xlu1 %v588_v40 }
 0x3a7   : > { %v590_v53 = vpop.xlane.xlu1 %589 }
 0x3a8   : > { %v591_v54 = vmul.f32 0.015625, %v590_v53 }
 0x3aa   : > { %v592_v55 = vadd.f32 1e-05, %v591_v54 }
 0x3ac   : > { %1257 = vrsqrt.f32 %v592_v55 }
 0x3ad   : > { %1259 = vtanh.f32 %v570_v49 }
 0x3b9   : > { %v1258_v57 = vpop.eup %1257 }
 0x3ba   : > { %v594_v60 = vmul.f32 %v1258_v57, %v586_v38  ;;  %v1260_v50 = vpop.eup %1259 }
 0x3bb   : > { %v574_v51 = vadd.f32 1.0, %v1260_v50 }
 0x3bc   : > { %v601_v62 = vmul.f32 %v1057_v58, %v594_v60  ;;  %v1073_v60 = vld [vmem:[%s1831_s10] ss:$0 sm:$0xff] }
 0x3bd   : > { %v576_v53 = vmul.f32 %v574_v51, %v560_v52 }
 0x3be   : > { %v608_v1 = vadd.f32 %v1058_v61, %v601_v62 }
 0x3c0   : > { %v637_v4 = vrot.slane %v608_v1, 7  ;;  %v636_v8 = vmul.f32 %v1060_v3, %v608_v1  ;;  %v616_v40 = vmul.f32 %v1059_v35, %v608_v1 }
 0x3c2   : > { %v644_v6 = vmul.f32 %v1061_v2, %v637_v4  ;;  %v647_v7 = vrot.slane %v637_v4, 7 }
 0x3c4   : > { %v645_v10 = vsel %vm639_vm3, %v644_v6, 0.0  ;;  %v654_v11 = vmul.f32 %v1062_v5, %v647_v7  ;;  %v657_v12 = vrot.slane %v647_v7, 7 }
 0x3c5   : > { %v646_v13 = vadd.f32 %v645_v10, %v636_v8 }
 0x3c6   : > { %v655_v15 = vsel %vm649_vm4, %v654_v11, 0.0  ;;  %v664_v16 = vmul.f32 %v1063_v9, %v657_v12  ;;  %v667_v17 = vrot.slane %v657_v12, 7 }
 0x3c7   : > { %v656_v18 = vadd.f32 %v655_v15, %v646_v13 }
 0x3c8   : > { %v665_v20 = vsel %vm659_vm5, %v664_v16, 0.0  ;;  %v674_v21 = vmul.f32 %v1064_v14, %v667_v17  ;;  %v677_v23 = vrot.slane %v667_v17, 7 }
 0x3c9   : > { %v666_v24 = vadd.f32 %v665_v20, %v656_v18 }
 0x3ca   : > { %v675_v26 = vsel %vm669_vm6, %v674_v21, 0.0  ;;  %v684_v27 = vmul.f32 %v1065_v19, %v677_v23  ;;  %v687_v28 = vrot.slane %v677_v23, 7 }
 0x3cb   : > { %v676_v29 = vadd.f32 %v675_v26, %v666_v24 }
 0x3cc   : > { %v685_v31 = vsel %vm679_vm7, %v684_v27, 0.0  ;;  %v694_v32 = vmul.f32 %v1066_v25, %v687_v28  ;;  %v697_v33 = vrot.slane %v687_v28, 7 }
 0x3cd   : > { %v686_v34 = vadd.f32 %v685_v31, %v676_v29 }
 0x3ce   : > { %v695_v36 = vsel %vm689_vm8, %v694_v32, 0.0  ;;  %v704_v37 = vmul.f32 %v1067_v30, %v697_v33 }
 0x3cf   : > { %v696_v38 = vadd.f32 %v695_v36, %v686_v34 }
 0x3d0   : > { %v705_v39 = vsel %vm699_vm9, %v704_v37, 0.0 }
 0x3d1   : > { %v706_v41 = vadd.f32 %v705_v39, %v696_v38 }
 0x3d3   : > { %v707_v42 = vadd.f32 %v706_v41, %v616_v40 }
 0x3d5   : > { %v708_v43 = vpack.c.bf16 %v707_v42, %v707_v42 }
 0x3d7   : > { %1109 = vmatmul.mubr.msk.bf16.vlgmr.msra.gmra.mxu1 %vm580_vm1, %v708_v43 }
 0x497   : > { %v778_v54 = vpop.f32.mrf.mxu1 }
 0x498   : > { %v784_v55 = vmul.f32 %v778_v54, %v576_v53 }
 0x499   : > { %v1110_v56 = vpop.f32.mrf.mxu1 }
 0x49a   : > { %v785_v57 = vpack.c.bf16 %v784_v55, %v784_v55 }
 0x49b   : > { %v781_v58 = vpop.f32.mrf.mxu1 }
 0x49c   : > { %1129 = vmatmul.mubr.bf16.vlgmr.msra.gmra.mxu0 %v785_v57 }
 0x49d   : > { %v1111_v59 = vpop.f32.mrf.mxu1 }
 0x55c   : > { %v891_v61 = vpop.f32.mrf.mxu0 }
 0x55d   : > { %v892_v22 = vadd.f32 %v1073_v60, %v891_v61 }
 0x55e   : > { %v1130_v62 = vpop.f32.mrf.mxu0 }
 0x55f   : > { %v897_v63 = vadd.f32 %v892_v22, %v1705_v0 }
 0x560   : > { %v894_v1 = vpop.f32.mrf.mxu0 }
 0x561   : > { %898 = vst.msk [vmem:[%s453_s30] sm:$0xff] %vm462_vm0, %v897_v63 }
 0x562   : > { %v1131_v2 = vpop.f32.mrf.mxu0 }
 0x563   : > { %1430 = shalt.err (!%p1427_p4)
}
 0x564   : > { %s1431_s29 = scalar_lea.hbm %s1779_s14, 128  ;;  %s1435_s24 = scalar_lea.hbm %s1832_s11, 256 }
 0x565   : > { %p1432_p7 = scmp.ne.s32.totalorder %s1779_s14, %s1431_s29  ;;  %p1436_p11 = scmp.lt.s32.totalorder %s1779_s14, %s1832_s11 }
 0x566   : > { %p1437_p0 = scmp.lt.s32.totalorder %s1435_s24, %s1431_s29 }
 0x567   : > { %p1433_p8 = pnand %p1432_p7, %p1855_p9 }
 0x568   : > { %p1438_p1 = por %p1437_p0, %p1436_p11 }
 0x569   : > { %p1434_p12 = pneg %p1433_p8 }
 0x56b   : > { %p1439_p2 = pnand %p1438_p1, %p1434_p12 }
 0x56d   : > { %1442 = shalt.err (!%p1439_p2)
}
 0x56e   : > { %1156 = dma.vmem_to_hbm [thread:$0]  (%p1855_p9), %s1781_s26, 128, %s1779_s14, %s900_s21  }
 0x56f PF: > { %p1193_p3 = scmp.ge.s32.totalorder %s1493_s20, 2  ;;  %s925_s2 = sand.u32 1, %s1481_s17  }
 0x570   : > { %p1856_p5 = scmp.ne.s32.totalorder %s1841_s28, 0  ;;  %s926_s16 = scalar_lea.sflag [#allocation4], %s925_s2 }
 0x572   : > { %p1178_p6 = pnand %p1193_p3, %p1856_p5 }
 0x574   : > { %p1179_p10 = pneg %p1178_p6 }
 0x576   : > { %1476 = dma.done.wait (%p1179_p10), %s926_s16, 128  }
 0x577   : > { %1478 = vsyncadd (%p1179_p10), %s926_s16, 4294967168  ;;  %s1857_s25 = sld [smem:[#allocation19_spill]]  ;;  %p25_p13 = scmp.ge.s32.totalorder %s1590_s23, 4  }
 0x578   : > { %s1858_s19 = sld [smem:[#allocation20_spill]]  ;;  %s1859_s17 = smov %s1485_s18 }
 0x579   : > { %s1861_s20 = smov %s1590_s23  ;;  %27 = sbr.rel (!%p25_p13) target bundleno = 9 (0x9), region = 124 }
 0x57d   : > { %s1860_s18 = smov %s1857_s25 }
 0x57e   :  { %931 = vsyncpa [#allocation3], 1 }
 0x57f   :  { %933 = vsyncpa [#allocation3 + $0x1], 1 }
 0x580   :  { %934 = vsyncpa [#allocation6], 1 }
 0x581   :  { %935 = vsyncpa [#allocation9], 1 }
 0x582   :  { %936 = vsyncpa [#allocation12], 1 }
 0x583   :  { %937 = vsyncpa [#allocation4], 1 }
 0x584   :  { %939 = vsyncpa [#allocation4 + $0x1], 1 }

// kernel: tpu_custom_call.1
= control target key start
LH: loop header
LB: loop body
LE: loop exit
PB: predicated region body
PF: predicated region fallthrough
CT: control target
= control target key end

     0   :  { %s1821_s0 = inlined_call_operand.vmem [shape: f32[16,32], index: 0, kind: input, shape index: {}]   ;;  %s1822_s1 = inlined_call_operand.hbm [shape: f32[1,32], index: 1, kind: input, shape index: {}]   ;;  %s1823_s2 = inlined_call_operand.hbm [shape: f32[1,32], index: 2, kind: input, shape index: {}]   ;;  %s1824_s3 = inlined_call_operand.vmem [shape: bf16[32,192], index: 3, kind: input, shape index: {}]   ;;  %s1825_s4 = inlined_call_operand.hbm [shape: f32[1,64], index: 4, kind: input, shape index: {}]   ;;  %s1826_s5 = inlined_call_operand.hbm [shape: f32[1,64], index: 5, kind: input, shape index: {}]   ;;  %s1827_s6 = inlined_call_operand.hbm [shape: f32[1,64], index: 6, kind: input, shape index: {}]   ;;  %s1828_s7 = inlined_call_operand.hbm [shape: f32[8,64], index: 7, kind: input, shape index: {}]   ;;  %s1829_s8 = inlined_call_operand.vmem [shape: bf16[64,128], index: 8, kind: input, shape index: {}]   ;;  %s1830_s9 = inlined_call_operand.vmem [shape: bf16[128,32], index: 9, kind: input, shape index: {}]   ;;  %s1831_s10 = inlined_call_operand.vmem [shape: f32[1,32], index: 10, kind: input, shape index: {}]   ;;  %s1832_s11 = inlined_call_operand.hbm [shape: f32[16,32], index: 11, kind: output, shape index: {}]  }
   0x1   :  { %1837 = sst [smem:[#allocation21_spill]] %s1823_s2 }
   0x2   :  { %16 = vsyncpa [#allocation3], 0 }
   0x3   :  { %17 = vsyncpa [#allocation6], 0 }
   0x4   :  { %18 = vsyncpa [#allocation9], 0 }
   0x5   :  { %19 = vsyncpa [#allocation12], 0 }
   0x6   :  { %20 = vsyncpa [#allocation4], 0 }
   0x7   :  { %22 = vsyncpa [#allocation4 + $0x1], 0  ;;  %s1565_s17 = smov 0   ;;  %s1567_s18 = smov 0  }
   0x8   :  { %s1569_s19 = smov 0   ;;  %s1571_s20 = smov 0  }
   0x9 LB: > { %1838 = sst [smem:[#allocation19_spill]] %s1489_s19  ;;  %s1586_s21 = sadd.s32 4294967295, %s1493_s20   ;;  %s1493_s20 = sphi %s1571_s20, %s1861_s20   ;;  %s1489_s19 = sphi %s1569_s19, %s1858_s19   ;;  %s1485_s18 = sphi %s1567_s18, %s1860_s18   ;;  %s1481_s17 = sphi %s1565_s17, %s1859_s17  }
   0xa   : > { %s1032_s22 = sadd.s32 4294967294, %s1493_s20   ;;  %s1590_s23 = sadd.s32 1, %s1493_s20  }
   0xb   : > { %s271_s24 = sadd.s32 1, %s1489_s19  ;;  %s268_s25 = ssub.s32 %s1493_s20, %s1590_s23 }
   0xc   : > { %p281_p0 = scmp.ne.s32.totalorder %s1489_s19, %s1485_s18  ;;  %p269_p1 = scmp.eq.s32.totalorder %s268_s25, 0 }
   0xd   : > { %p282_p2 = scmp.eq.s32.totalorder %s1586_s21, 1  ;;  %p287_p3 = scmp.ne.s32.totalorder %s1485_s18, %s1481_s17 }
   0xe   : > { %p288_p4 = scmp.eq.s32.totalorder %s1032_s22, 1  ;;  %p1033_p7 = scmp.ge.s32.totalorder %s1493_s20, 1 }
   0xf   : > { %s1601_s26 = scalar_select %p269_p1, %s1489_s19, %s271_s24  }
  0x10   : > { %p1603_p5 = por %p282_p2, %p281_p0  ;;  %p1607_p6 = por %p288_p4, %p287_p3 }
  0x11   : > { %1839 = sst [smem:[#allocation20_spill]] %s1601_s26  ;;  %p295_p8 = scmp.lt.s32.totalorder %s1493_s20, 3 }
  0x12   : > { %s1840_s27 = scalar_select %p1603_p5, 1, 0 }
  0x13   : > { %s1841_s28 = scalar_select %p1607_p6, 1, 0 }
  0x14   : > { %p1833_p9 = scmp.eq.s32.totalorder %s1586_s21, 0  ;;  %p1614_p10 = pnand %p1033_p7, %p295_p8 }
  0x15   : > { %s1495_s30 = smov [#allocation5]   ;;  %s1496_s13 = smov [#allocation8]  }
  0x16   : > { %s1842_s29 = scalar_select %p1614_p10, 1, 0 }
  0x17   : > { %s319_s12 = sshll.u32 %s1495_s30, 4  ;;  %p1158_p11 = pneg %p1614_p10  ;;  %s320_s12 = int_to_ptr.vmem [resolvable:$true] %s319_s12 }
  0x18   : > { %s344_s14 = sshll.u32 %s1496_s13, 4  ;;  %s1497_s16 = smov [#allocation2]   ;;  %s345_s14 = int_to_ptr.vmem [resolvable:$true] %s344_s14 }
  0x19   : > { %p1622_p12 = pnand %p1833_p9, %p1158_p11  ;;  %s308_s22 = sshll.u32 %s1497_s16, 4  ;;  %s1626_s22 = int_to_ptr.vmem [resolvable:$true] %s308_s22 }
  0x1a   : > { %s1272_s25 = scalar_lea.vmem %s320_s12, 16  ;;  %s1279_s30 = scalar_lea.vmem %s320_s12, 32 }
  0x1b   : > { %p1630_p13 = pneg %p1622_p12  ;;  %p1273_p0 = scmp.ne.s32.totalorder %s320_s12, %s1272_s25 }
  0x1c   : > { %p1280_p3 = scmp.lt.s32.totalorder %s320_s12, %s320_s12  ;;  %p1281_p4 = scmp.lt.s32.totalorder %s1279_s30, %s1272_s25 }
  0x1d   : > { %p1275_p1 = pnand %p1273_p0, %p1630_p13 }
  0x1e   : > { %p1282_p7 = por %p1281_p4, %p1280_p3 }
  0x1f   : > { %p1276_p2 = pneg %p1275_p1 }
  0x21   : > { %p1283_p8 = pnand %p1282_p7, %p1276_p2 }
  0x23   : > { %1286 = shalt.err (!%p1283_p8)
}
  0x24   : > { %s1845_s2 = sld [smem:[#allocation21_spill]]  ;;  %s1298_s26 = scalar_lea.vmem %s345_s14, 16 }
  0x25   : > { %p1299_p11 = scmp.ne.s32.totalorder %s345_s14, %s1298_s26  ;;  %s1305_s19 = scalar_lea.vmem %s345_s14, 32 }
  0x26   : > { %p1306_p0 = scmp.lt.s32.totalorder %s345_s14, %s345_s14  ;;  %p1307_p1 = scmp.lt.s32.totalorder %s1305_s19, %s1298_s26 }
  0x27   : > { %p1301_p9 = pnand %p1299_p11, %p1630_p13 }
  0x28   : > { %p1308_p5 = por %p1307_p1, %p1306_p0 }
  0x29   : > { %p1302_p6 = pneg %p1301_p9 }
  0x2a   : > { %1164 = dma.hbm_to_vmem [thread:$0]  (!%p1622_p12), %s1845_s2, 16, %s320_s12, [#allocation6]  }
  0x2b   : > { %p1309_p10 = pnand %p1308_p5, %p1302_p6 }
  0x2d   : > { %1312 = shalt.err (!%p1309_p10)
}
  0x2e   : > { %1170 = dma.hbm_to_vmem [thread:$0]  (!%p1622_p12), %s1826_s5, 16, %s345_s14, [#allocation9]  }
  0x2f   : > { %s1324_s12 = scalar_lea.vmem %s1626_s22, 16  ;;  %s1331_s19 = scalar_lea.vmem %s1626_s22, 32 }
  0x30   : > { %p1325_p2 = scmp.ne.s32.totalorder %s1626_s22, %s1324_s12  ;;  %p1332_p5 = scmp.lt.s32.totalorder %s1626_s22, %s1626_s22 }
  0x31   : > { %p1333_p6 = scmp.lt.s32.totalorder %s1331_s19, %s1324_s12 }
  0x32   : > { %p1327_p9 = pnand %p1325_p2, %p1630_p13 }
  0x33   : > { %p1334_p10 = por %p1333_p6, %p1332_p5 }
  0x34   : > { %p1328_p3 = pneg %p1327_p9 }
  0x36   : > { %p1335_p4 = pnand %p1334_p10, %p1328_p3 }
  0x38   : > { %1338 = shalt.err (!%p1335_p4)
}
  0x39   : > { %1161 = dma.hbm_to_vmem [thread:$0]  (!%p1622_p12), %s1822_s1, 16, %s1626_s22, [#allocation3]  }
  0x3a   : > { %s1498_s14 = smov [#allocation7]   ;;  %s1499_s25 = smov [#allocation10]  }
  0x3b   : > { %s333_s16 = sshll.u32 %s1498_s14, 4  ;;  %s355_s30 = sshll.u32 %s1499_s25, 4  ;;  %s334_s16 = int_to_ptr.vmem [resolvable:$true] %s333_s16  ;;  %s356_s30 = int_to_ptr.vmem [resolvable:$true] %s355_s30 }
  0x3c   : > { %s1350_s2 = scalar_lea.vmem %s334_s16, 16  ;;  %s1357_s12 = scalar_lea.vmem %s334_s16, 32 }
  0x3d   : > { %p1351_p7 = scmp.ne.s32.totalorder %s334_s16, %s1350_s2  ;;  %p1358_p0 = scmp.lt.s32.totalorder %s334_s16, %s334_s16 }
  0x3e   : > { %p1359_p1 = scmp.lt.s32.totalorder %s1357_s12, %s1350_s2 }
  0x3f   : > { %p1353_p8 = pnand %p1351_p7, %p1630_p13 }
  0x40   : > { %p1360_p2 = por %p1359_p1, %p1358_p0 }
  0x41   : > { %p1354_p11 = pneg %p1353_p8 }
  0x43   : > { %p1361_p9 = pnand %p1360_p2, %p1354_p11 }
  0x45   : > { %1364 = shalt.err (!%p1361_p9)
}
  0x46   : > { %1167 = dma.hbm_to_vmem [thread:$0]  (!%p1622_p12), %s1825_s4, 16, %s334_s16, [#allocation6]  }
  0x47   : > { %s1376_s26 = scalar_lea.vmem %s356_s30, 16  ;;  %s1383_s13 = scalar_lea.vmem %s356_s30, 32 }
  0x48   : > { %p1377_p3 = scmp.ne.s32.totalorder %s356_s30, %s1376_s26  ;;  %p1384_p10 = scmp.lt.s32.totalorder %s356_s30, %s356_s30 }
  0x49   : > { %p1385_p4 = scmp.lt.s32.totalorder %s1383_s13, %s1376_s26 }
  0x4a   : > { %p1379_p5 = pnand %p1377_p3, %p1630_p13 }
  0x4b   : > { %p1386_p7 = por %p1385_p4, %p1384_p10 }
  0x4c   : > { %p1380_p6 = pneg %p1379_p5 }
  0x4e   : > { %p1387_p8 = pnand %p1386_p7, %p1380_p6 }
  0x50   : > { %1390 = shalt.err (!%p1387_p8)
}
  0x51   : > { %1173 = dma.hbm_to_vmem [thread:$0]  (!%p1622_p12), %s1827_s6, 16, %s356_s30, [#allocation9]  }
  0x52   : > { %s1500_s16 = smov [#allocation11]  }
  0x53   : > { %s366_s25 = sshll.u32 %s1500_s16, 4  ;;  %s367_s25 = int_to_ptr.vmem [resolvable:$true] %s366_s25 }
  0x54   : > { %s1402_s12 = scalar_lea.vmem %s367_s25, 128  ;;  %p1410_p2 = scmp.lt.s32.totalorder %s367_s25, %s367_s25 }
  0x55   : > { %p1403_p11 = scmp.ne.s32.totalorder %s367_s25, %s1402_s12  ;;  %p1411_p9 = scmp.lt.s32.totalorder %s1402_s12, %s1402_s12 }
  0x57   : > { %p1405_p0 = pnand %p1403_p11, %p1630_p13  ;;  %p1412_p3 = por %p1411_p9, %p1410_p2 }
  0x59   : > { %p1406_p1 = pneg %p1405_p0 }
  0x5b   : > { %p1413_p5 = pnand %p1412_p3, %p1406_p1 }
  0x5d   : > { %1416 = shalt.err (!%p1413_p5)
}
  0x5e   : > { %1176 = dma.hbm_to_vmem [thread:$0]  (!%p1622_p12), %s1828_s7, 128, %s367_s25, [#allocation12]  }
  0x5f   : > { %p1846_p6 = scmp.ne.s32.totalorder %s1842_s29, 0 }
  0x60   : > { %p1847_p10 = scmp.eq.s32.totalorder (!%p1846_p6), %s1586_s21, 0 }
  0x61   : > { %395 = sbr.rel (%p1846_p6) target bundleno = 1391 (0x56f), region = 64 }
  0x66   : > { %1460 = dma.done.wait (%p1847_p10), [#allocation3], 16   ;;  %p1848_p13 = pmov %p1847_p10 }
  0x67   : > { %p1849_p4 = pmov %p1847_p10 }
  0x68   : > { %1462 = vsyncadd (%p1848_p13), [#allocation3], 4294967280 }
  0x69   : > { %1464 = dma.done.wait (%p1849_p4), [#allocation6], 32   ;;  %p1850_p7 = pmov %p1849_p4 }
  0x6a   : > { %p1851_p8 = pmov %p1849_p4 }
  0x6b   : > { %1466 = vsyncadd (%p1850_p7), [#allocation6], 4294967264 }
  0x6c   : > { %1468 = dma.done.wait (%p1851_p8), [#allocation9], 32   ;;  %p1852_p12 = pmov %p1849_p4 }
  0x6d   : > { %p1853_p11 = pmov %p1849_p4 }
  0x6e   : > { %1470 = vsyncadd (%p1852_p12), [#allocation9], 4294967264 }
  0x6f   : > { %1472 = dma.done.wait (%p1853_p11), [#allocation12], 128   ;;  %p1854_p0 = pmov %p1849_p4 }
  0x70   : > { %p454_p1 = scmp.lt.s32.totalorder %s1586_s21, 1  ;;  %vm462_vm0 = vcmask 261120   ;;  %v1235_v7 = vld [vmem:[%s1824_s3 + $0x14] ss:$8 sps:$4 sm:$0xff]   ;;  %v1237_v8 = vld [vmem:[%s1824_s3 + $0x10] ss:$8 sps:$4 sm:$0xff]   ;;  %v617_v56 = vlaneseq }
  0x71   : > { %1474 = vsyncadd (%p1854_p0), [#allocation12], 4294967168  ;;  %v1238_v9 = vld [vmem:[%s1824_s3 + $0x4] ss:$8 sps:$4 sm:$0xff]   ;;  %531 = vmatprep.subr.bf16.mxu1 %v1235_v7  ;;  %v1501_v10 = vmov 0   ;;  %vm580_vm1 = vcmask 523264  }
  0x72   : > { %s455_s29 = scalar_select %p454_p1, %s1586_s21, 1  ;;  %551 = vmatprep.mubr.bf16.mxu1 %v1501_v10  ;;  %532 = vmatpush1.bf16.msra.mxu1 %v1237_v8  ;;  %v1240_v11 = vld [vmem:[%s1824_s3] ss:$8 sps:$4 sm:$0xff]   ;;  %v1241_v41 = vld [vmem:[%s1829_s8 + $0x18] sm:$0xff]   ;;  %v1502_v42 = vmov 0.0   ;;  %vm1503_vm2 = vmmov 0  }
  0x73   : > { %533 = vmatprep.subr.bf16.mxu1 %v1238_v9  ;;  %v1050_v16 = vld [vmem:[#allocation2] ss:$0 sm:$0xff]  ;;  %v1051_v18 = vld [vmem:[#allocation5] ss:$0 sm:$0xff]  ;;  %v1242_v43 = vld [vmem:[%s1829_s8 + $0x10] sm:$0xff]   ;;  %1112 = vmatprep.subr.bf16.mxu0 %v1502_v42  ;;  %v618_v59 = vshrl.u32 %v617_v56, 7 }
  0x74   : > { %s1049_s15 = sshll.u32 %s455_s29, 3  ;;  %1128 = vmatprep.mubr.msk.bf16.mxu0 %vm1503_vm2, %v1502_v42  ;;  %v1243_v44 = vld [vmem:[%s1829_s8 + $0x8] sm:$0xff]   ;;  %v1244_v45 = vld [vmem:[%s1829_s8] sm:$0xff]   ;;  %v1245_v46 = vld [vmem:[%s1830_s9 + $0x38] sm:$0xff]   ;;  %s451_s19 = sand.u32 1, %s1485_s18  }
  0x75   : > { %s457_s26 = scalar_lea.vmem %s1821_s0, %s1049_s15  ;;  %1113 = vmatpush3.bf16.msra.mxu0 %v1245_v46  ;;  %v1246_v47 = vld [vmem:[%s1830_s9 + $0x30] sm:$0xff]   ;;  %v1247_v48 = vld [vmem:[%s1830_s9 + $0x28] sm:$0xff]   ;;  %v1248_v49 = vld [vmem:[%s1830_s9 + $0x20] sm:$0xff]   ;;  %v623_v63 = vand.u32 7, %v618_v59  ;;  %s1048_s22 = sshll.u32 %s451_s19, 3 }
  0x76   : > { %v1705_v0 = vld [vmem:[%s457_s26] sm:$0xff]  ;;  %534 = vmatpush1.bf16.msra.mxu1 %v1240_v11  ;;  %1114 = vmatprep.subr.bf16.mxu0 %v1502_v42  ;;  %v1249_v50 = vld [vmem:[%s1830_s9 + $0x18] sm:$0xff]   ;;  %v1250_v51 = vld [vmem:[%s1830_s9 + $0x10] sm:$0xff]   ;;  %s1083_s24 = sshll.u32 %s1586_s21, 7  ;;  %s453_s30 = scalar_lea.vmem [#allocation13], %s1048_s22 }
  0x77   : > { %v463_v1 = vsel %vm462_vm0, %v1705_v0, 0.0  ;;  %1100 = vmatprep.subr.bf16.mxu1 %v1502_v42  ;;  %v1251_v52 = vld [vmem:[%s1830_s9 + $0x8] sm:$0xff]   ;;  %v1057_v58 = vld [vmem:[#allocation7] ss:$0 sm:$0xff]  ;;  %v1058_v61 = vld [vmem:[#allocation8] ss:$0 sm:$0xff]  ;;  %s1779_s14 = scalar_lea.hbm %s1832_s11, %s1083_s24 }
  0x78   : > { %464 = vadd.xlane.f32.xlu0 %v463_v1  ;;  %vm639_vm3 = vcmp.ge.s32.totalorder %v623_v63, 1  ;;  %vm649_vm4 = vcmp.ge.s32.totalorder %v623_v63, 2  ;;  %v1063_v9 = vld [vmem:[#allocation11 + $0x3] ss:$0 sm:$0xff]  ;;  %vm659_vm5 = vcmp.ge.s32.totalorder %v623_v63, 3  ;;  %vm669_vm6 = vcmp.ge.s32.totalorder %v623_v63, 4 }
  0x79   : > { %1115 = vmatpush3.bf16.msra.mxu0 %v1246_v47  ;;  %vm679_vm7 = vcmp.ge.s32.totalorder %v623_v63, 5  ;;  %vm689_vm8 = vcmp.ge.s32.totalorder %v623_v63, 6  ;;  %vm699_vm9 = vcmp.ge.s32.totalorder %v623_v63, 7  ;;  %s913_s26 = sshll.u32 %s453_s30, 4  ;;  %s900_s21 = scalar_lea.sflag [#allocation4], %s451_s19  ;;  %s1781_s26 = int_to_ptr.vmem [resolvable:$true] %s913_s26 }
  0x7a   : > { %1116 = vmatprep.subr.bf16.mxu0 %v1502_v42  ;;  %s1417_s16 = scalar_lea.vmem %s1781_s26, 128  ;;  %p1855_p9 = scmp.ne.s32.totalorder %s1840_s27, 0 }
  0x7b   : > { %p1418_p2 = scmp.ne.s32.totalorder %s1781_s26, %s1417_s16  ;;  %s1504_s25 = smov [#allocation13]  }
  0x7c   : > { %s1421_s12 = sshll.u32 %s1504_s25, 4  ;;  %s1422_s12 = int_to_ptr.vmem [resolvable:$false] %s1421_s12 }
  0x7d   : > { %1117 = vmatpush3.bf16.msra.mxu0 %v1247_v48  ;;  %p1419_p3 = pnand %p1418_p2, %p1855_p9  ;;  %s1423_s22 = scalar_lea.vmem %s1422_s12, 256 }
  0x7e   : > { %1118 = vmatprep.subr.bf16.mxu0 %v1502_v42  ;;  %p1424_p6 = scmp.lt.s32.totalorder %s1781_s26, %s1422_s12  ;;  %p1425_p10 = scmp.lt.s32.totalorder %s1423_s22, %s1417_s16 }
  0x7f   : > { %p1420_p5 = pneg %p1419_p3 }
  0x80   : > { %p1426_p13 = por %p1425_p10, %p1424_p6 }
  0x81   : > { %1119 = vmatpush3.bf16.msra.mxu0 %v1248_v49 }
  0x82   : > { %1120 = vmatprep.subr.bf16.mxu0 %v1502_v42  ;;  %p1427_p4 = pnand %p1426_p13, %p1420_p5 }
  0x85   : > { %1121 = vmatpush3.bf16.msra.mxu0 %v1249_v50 }
  0x86   : > { %1122 = vmatprep.subr.bf16.mxu0 %v1502_v42 }
  0x89   : > { %1123 = vmatpush3.bf16.msra.mxu0 %v1250_v51 }
  0x8a   : > { %1124 = vmatprep.subr.bf16.mxu0 %v1502_v42 }
  0x8d   : > { %1125 = vmatpush3.bf16.msra.mxu0 %v1251_v52 }
  0x8e   : > { %1126 = vmatprep.subr.bf16.mxu0 %v1502_v42 }
 0x101   : > { %v465_v2 = vpop.xlane.xlu0 %464 }
 0x102   : > { %v467_v3 = vmul.f32 0.03125, %v465_v2  ;;  %v1061_v2 = vld [vmem:[#allocation11 + $0x1] ss:$0 sm:$0xff] }
 0x104   : > { %v468_v4 = vsub.f32 %v1705_v0, %v467_v3  ;;  %v1060_v3 = vld [vmem:[#allocation11] ss:$0 sm:$0xff] }
 0x106   : > { %v469_v5 = vmul.f32 %v468_v4, %v468_v4 }
 0x108   : > { %v470_v6 = vsel %vm462_vm0, %v469_v5, 0.0  ;;  %v1062_v5 = vld [vmem:[#allocation11 + $0x2] ss:$0 sm:$0xff] }
 0x109   : > { %471 = vadd.xlane.f32.xlu0 %v470_v6 }
 0x192   : > { %v472_v12 = vpop.xlane.xlu0 %471 }
 0x193   : > { %v473_v13 = vmul.f32 0.03125, %v472_v12 }
 0x195   : > { %v474_v14 = vadd.f32 1e-05, %v473_v13 }
 0x197   : > { %1253 = vrsqrt.f32 %v474_v14  ;;  %v1064_v14 = vld [vmem:[#allocation11 + $0x4] ss:$0 sm:$0xff] }
 0x1a4   : > { %v1254_v15 = vpop.eup %1253 }
 0x1a5   : > { %v476_v17 = vmul.f32 %v1254_v15, %v468_v4 }
 0x1a7   : > { %v483_v19 = vmul.f32 %v1050_v16, %v476_v17 }
 0x1a9   : > { %v490_v20 = vadd.f32 %v1051_v18, %v483_v19  ;;  %v1065_v19 = vld [vmem:[#allocation11 + $0x5] ss:$0 sm:$0xff] }
 0x1ab   : > { %v491_v21 = vpack.c.bf16 %v490_v20, %v490_v20 }
 0x1ad   : > { %1056 = vmatmul.mubr.msk.bf16.vlgmr.msra.gmra.mxu1 %vm462_vm0, %v491_v21 }
 0x1ae   : > { %1108 = vmatprep.mubr.msk.bf16.mxu1 %vm1503_vm2, %v1502_v42  ;;  %1101 = vmatpush3.bf16.msra.mxu1 %v1241_v41 }
 0x1af   : > { %1102 = vmatprep.subr.bf16.mxu1 %v1502_v42 }
 0x1b2   : > { %1103 = vmatpush3.bf16.msra.mxu1 %v1242_v43 }
 0x1b3   : > { %1104 = vmatprep.subr.bf16.mxu1 %v1502_v42 }
 0x1b6   : > { %1105 = vmatpush3.bf16.msra.mxu1 %v1243_v44  ;;  %v1252_v44 = vld [vmem:[%s1830_s9] sm:$0xff]  }
 0x1b7   : > { %1106 = vmatprep.subr.bf16.mxu1 %v1502_v42  ;;  %1127 = vmatpush3.bf16.msra.mxu0 %v1252_v44 }
 0x1ba   : > { %1107 = vmatpush3.bf16.msra.mxu1 %v1244_v45 }
 0x26d   : > { %v1724_v22 = vpop.f32.mrf.mxu1 }
 0x26e   : > { %v562_v45 = vmul.f32 0.044715, %v1724_v22  ;;  %v560_v52 = vmul.f32 0.5, %v1724_v22 }
 0x26f   : > { %v555_v23 = vpop.f32.mrf.mxu1 }
 0x270   : > { %v563_v24 = vmul.f32 0.044715, %v555_v23  ;;  %v561_v32 = vmul.f32 0.5, %v555_v23  ;;  %v564_v46 = vmul.f32 %v562_v45, %v1724_v22 }
 0x271   : > { %v557_v25 = vpop.f32.mrf.mxu1 }
 0x272   : > { %v565_v26 = vmul.f32 %v563_v24, %v555_v23  ;;  %v1066_v25 = vld [vmem:[#allocation11 + $0x6] ss:$0 sm:$0xff]  ;;  %v566_v47 = vmul.f32 %v564_v46, %v1724_v22 }
 0x273   : > { %v558_v27 = vpop.f32.mrf.mxu1 }
 0x274   : > { %v567_v28 = vmul.f32 %v565_v26, %v555_v23  ;;  %v568_v48 = vadd.f32 %v566_v47, %v1724_v22 }
 0x276   : > { %v569_v29 = vadd.f32 %v567_v28, %v555_v23  ;;  %v570_v49 = vmul.f32 0.7978846, %v568_v48 }
 0x278   : > { %v571_v30 = vmul.f32 0.7978846, %v569_v29 }
 0x27a   : > { %1255 = vtanh.f32 %v571_v30  ;;  %v1067_v30 = vld [vmem:[#allocation11 + $0x7] ss:$0 sm:$0xff] }
 0x287   : > { %v1256_v31 = vpop.eup %1255 }
 0x288   : > { %v575_v33 = vadd.f32 1.0, %v1256_v31 }
 0x28a   : > { %v577_v34 = vmul.f32 %v575_v33, %v561_v32 }
 0x28c   : > { %v581_v35 = vsel %vm580_vm1, %v577_v34, 0.0 }
 0x28d   : > { %582 = vadd.xlane.f32.xlu1 %v581_v35  ;;  %v1059_v35 = vld [vmem:[#allocation10] ss:$0 sm:$0xff] }
 0x316   : > { %v583_v36 = vpop.xlane.xlu1 %582 }
 0x317   : > { %v585_v37 = vmul.f32 0.015625, %v583_v36 }
 0x319   : > { %v586_v38 = vsub.f32 %v577_v34, %v585_v37 }
 0x31b   : > { %v587_v39 = vmul.f32 %v586_v38, %v586_v38 }
 0x31d   : > { %v588_v40 = vsel %vm580_vm1, %v587_v39, 0.0 }
 0x31e   : > { %589 = vadd.xlane.f32.xlu1 %v588_v40 }
 0x3a7   : > { %v590_v53 = vpop.xlane.xlu1 %589 }
 0x3a8   : > { %v591_v54 = vmul.f32 0.015625, %v590_v53 }
 0x3aa   : > { %v592_v55 = vadd.f32 1e-05, %v591_v54 }
 0x3ac   : > { %1257 = vrsqrt.f32 %v592_v55 }
 0x3ad   : > { %1259 = vtanh.f32 %v570_v49 }
 0x3b9   : > { %v1258_v57 = vpop.eup %1257 }
 0x3ba   : > { %v594_v60 = vmul.f32 %v1258_v57, %v586_v38  ;;  %v1260_v50 = vpop.eup %1259 }
 0x3bb   : > { %v574_v51 = vadd.f32 1.0, %v1260_v50 }
 0x3bc   : > { %v601_v62 = vmul.f32 %v1057_v58, %v594_v60  ;;  %v1073_v60 = vld [vmem:[%s1831_s10] ss:$0 sm:$0xff] }
 0x3bd   : > { %v576_v53 = vmul.f32 %v574_v51, %v560_v52 }
 0x3be   : > { %v608_v1 = vadd.f32 %v1058_v61, %v601_v62 }
 0x3c0   : > { %v637_v4 = vrot.slane %v608_v1, 7  ;;  %v636_v8 = vmul.f32 %v1060_v3, %v608_v1  ;;  %v616_v40 = vmul.f32 %v1059_v35, %v608_v1 }
 0x3c2   : > { %v644_v6 = vmul.f32 %v1061_v2, %v637_v4  ;;  %v647_v7 = vrot.slane %v637_v4, 7 }
 0x3c4   : > { %v645_v10 = vsel %vm639_vm3, %v644_v6, 0.0  ;;  %v654_v11 = vmul.f32 %v1062_v5, %v647_v7  ;;  %v657_v12 = vrot.slane %v647_v7, 7 }
 0x3c5   : > { %v646_v13 = vadd.f32 %v645_v10, %v636_v8 }
 0x3c6   : > { %v655_v15 = vsel %vm649_vm4, %v654_v11, 0.0  ;;  %v664_v16 = vmul.f32 %v1063_v9, %v657_v12  ;;  %v667_v17 = vrot.slane %v657_v12, 7 }
 0x3c7   : > { %v656_v18 = vadd.f32 %v655_v15, %v646_v13 }
 0x3c8   : > { %v665_v20 = vsel %vm659_vm5, %v664_v16, 0.0  ;;  %v674_v21 = vmul.f32 %v1064_v14, %v667_v17  ;;  %v677_v23 = vrot.slane %v667_v17, 7 }
 0x3c9   : > { %v666_v24 = vadd.f32 %v665_v20, %v656_v18 }
 0x3ca   : > { %v675_v26 = vsel %vm669_vm6, %v674_v21, 0.0  ;;  %v684_v27 = vmul.f32 %v1065_v19, %v677_v23  ;;  %v687_v28 = vrot.slane %v677_v23, 7 }
 0x3cb   : > { %v676_v29 = vadd.f32 %v675_v26, %v666_v24 }
 0x3cc   : > { %v685_v31 = vsel %vm679_vm7, %v684_v27, 0.0  ;;  %v694_v32 = vmul.f32 %v1066_v25, %v687_v28  ;;  %v697_v33 = vrot.slane %v687_v28, 7 }
 0x3cd   : > { %v686_v34 = vadd.f32 %v685_v31, %v676_v29 }
 0x3ce   : > { %v695_v36 = vsel %vm689_vm8, %v694_v32, 0.0  ;;  %v704_v37 = vmul.f32 %v1067_v30, %v697_v33 }
 0x3cf   : > { %v696_v38 = vadd.f32 %v695_v36, %v686_v34 }
 0x3d0   : > { %v705_v39 = vsel %vm699_vm9, %v704_v37, 0.0 }
 0x3d1   : > { %v706_v41 = vadd.f32 %v705_v39, %v696_v38 }
 0x3d3   : > { %v707_v42 = vadd.f32 %v706_v41, %v616_v40 }
 0x3d5   : > { %v708_v43 = vpack.c.bf16 %v707_v42, %v707_v42 }
 0x3d7   : > { %1109 = vmatmul.mubr.msk.bf16.vlgmr.msra.gmra.mxu1 %vm580_vm1, %v708_v43 }
 0x497   : > { %v778_v54 = vpop.f32.mrf.mxu1 }
 0x498   : > { %v784_v55 = vmul.f32 %v778_v54, %v576_v53 }
 0x499   : > { %v1110_v56 = vpop.f32.mrf.mxu1 }
 0x49a   : > { %v785_v57 = vpack.c.bf16 %v784_v55, %v784_v55 }
 0x49b   : > { %v781_v58 = vpop.f32.mrf.mxu1 }
 0x49c   : > { %1129 = vmatmul.mubr.bf16.vlgmr.msra.gmra.mxu0 %v785_v57 }
 0x49d   : > { %v1111_v59 = vpop.f32.mrf.mxu1 }
 0x55c   : > { %v891_v61 = vpop.f32.mrf.mxu0 }
 0x55d   : > { %v892_v22 = vadd.f32 %v1073_v60, %v891_v61 }
 0x55e   : > { %v1130_v62 = vpop.f32.mrf.mxu0 }
 0x55f   : > { %v897_v63 = vadd.f32 %v892_v22, %v1705_v0 }
 0x560   : > { %v894_v1 = vpop.f32.mrf.mxu0 }
 0x561   : > { %898 = vst.msk [vmem:[%s453_s30] sm:$0xff] %vm462_vm0, %v897_v63 }
 0x562   : > { %v1131_v2 = vpop.f32.mrf.mxu0 }
 0x563   : > { %1430 = shalt.err (!%p1427_p4)
}
 0x564   : > { %s1431_s29 = scalar_lea.hbm %s1779_s14, 128  ;;  %s1435_s24 = scalar_lea.hbm %s1832_s11, 256 }
 0x565   : > { %p1432_p7 = scmp.ne.s32.totalorder %s1779_s14, %s1431_s29  ;;  %p1436_p11 = scmp.lt.s32.totalorder %s1779_s14, %s1832_s11 }
 0x566   : > { %p1437_p0 = scmp.lt.s32.totalorder %s1435_s24, %s1431_s29 }
 0x567   : > { %p1433_p8 = pnand %p1432_p7, %p1855_p9 }
 0x568   : > { %p1438_p1 = por %p1437_p0, %p1436_p11 }
 0x569   : > { %p1434_p12 = pneg %p1433_p8 }
 0x56b   : > { %p1439_p2 = pnand %p1438_p1, %p1434_p12 }
 0x56d   : > { %1442 = shalt.err (!%p1439_p2)
}
 0x56e   : > { %1156 = dma.vmem_to_hbm [thread:$0]  (%p1855_p9), %s1781_s26, 128, %s1779_s14, %s900_s21  }
 0x56f PF: > { %p1193_p3 = scmp.ge.s32.totalorder %s1493_s20, 2  ;;  %s925_s2 = sand.u32 1, %s1481_s17  }
 0x570   : > { %p1856_p5 = scmp.ne.s32.totalorder %s1841_s28, 0  ;;  %s926_s16 = scalar_lea.sflag [#allocation4], %s925_s2 }
 0x572   : > { %p1178_p6 = pnand %p1193_p3, %p1856_p5 }
 0x574   : > { %p1179_p10 = pneg %p1178_p6 }
 0x576   : > { %1476 = dma.done.wait (%p1179_p10), %s926_s16, 128  }
 0x577   : > { %1478 = vsyncadd (%p1179_p10), %s926_s16, 4294967168  ;;  %s1857_s25 = sld [smem:[#allocation19_spill]]  ;;  %p25_p13 = scmp.ge.s32.totalorder %s1590_s23, 4  }
 0x578   : > { %s1858_s19 = sld [smem:[#allocation20_spill]]  ;;  %s1859_s17 = smov %s1485_s18 }
 0x579   : > { %s1861_s20 = smov %s1590_s23  ;;  %27 = sbr.rel (!%p25_p13) target bundleno = 9 (0x9), region = 124 }
 0x57d   : > { %s1860_s18 = smov %s1857_s25 }
 0x57e   :  { %931 = vsyncpa [#allocation3], 1 }
 0x57f   :  { %933 = vsyncpa [#allocation3 + $0x1], 1 }
 0x580   :  { %934 = vsyncpa [#allocation6], 1 }
 0x581   :  { %935 = vsyncpa [#allocation9], 1 }
 0x582   :  { %936 = vsyncpa [#allocation12], 1 }
 0x583   :  { %937 = vsyncpa [#allocation4], 1 }
 0x584   :  { %939 = vsyncpa [#allocation4 + $0x1], 1 }

</bundles_post_ra>
